<compile_context>
chip_gen: v7x
topology: tpu7x:2x2x1
jax: 0.10.0
libtpu: 0.0.40
codegen_flags: <defaults>
</compile_context>

<pallas_src>
import numpy as np
import jax
import jax.numpy as jnp
from jax.experimental import pallas as pl
from jax.experimental.pallas import tpu as pltpu


def _round_up(x, m):
    return ((x + m - 1) // m) * m


def aux_head_kernel(x_ref, w1_ref, b1_ref, w2_ref, b2_ref, w3_ref, b3_ref, out_ref):
    # x_ref : (64, NB, C) bf16  spatial-major block; rows = batch, lanes = channels
    # w1_ref: (C, 128)    bf16  1x1 conv weight, BN1 scale AND 1/25 pool scale folded
    # b1_ref: (1, 128)    f32   folded BN1 bias
    # w2_ref: (512, 768)  bf16  2x2 conv weight, 4 positions concatenated on K, BN2 scale folded
    # b2_ref: (1, 768)    f32   folded BN2 bias
    # w3_ref: (768, NCp)  bf16  linear weight (transposed, lane-padded)
    # b3_ref: (1, NCp)    f32   linear bias (lane-padded)
    # out_ref: (NB, NCp)  f32
    NB = out_ref.shape[0]

    # ----- ReLU (exactly once per element) + separable 5x5/stride-3 SUM pooling -----
    # pooled[p] (p = ph*2 + pw) holds the window SUM in f32; 1/25 is folded into w1.
    pooled = [None, None, None, None]
    for h in range(8):
        row = [jnp.maximum(x_ref[h * 8 + w], 0.0) for w in range(8)]      # bf16 (NB, C)
        s34 = row[3] + row[4]                                             # shared cols 3,4
        c0 = ((row[0] + row[1]) + row[2]) + s34                           # cols 0..4
        c3 = (s34 + (row[5] + row[6])) + row[7]                           # cols 3..7
        c0f = c0.astype(jnp.float32)
        c3f = c3.astype(jnp.float32)
        if h <= 4:      # rows 0..4 -> pooled output row ph = 0
            pooled[0] = c0f if pooled[0] is None else pooled[0] + c0f
            pooled[1] = c3f if pooled[1] is None else pooled[1] + c3f
        if h >= 3:      # rows 3..7 -> pooled output row ph = 1
            pooled[2] = c0f if pooled[2] is None else pooled[2] + c0f
            pooled[3] = c3f if pooled[3] is None else pooled[3] + c3f

    # ----- 1x1 conv: ONE fused M = 4*NB dot (+ folded BN1 bias + ReLU) -----
    pooled_cat = jnp.concatenate(pooled, axis=0).astype(jnp.bfloat16)     # (4*NB, C)
    h1 = jnp.dot(pooled_cat, w1_ref[...],
                 preferred_element_type=jnp.float32)                      # (4*NB, 128)
    h1 = jnp.maximum(h1 + b1_ref[...], 0.0).astype(jnp.bfloat16)

    # ----- 2x2 conv: ONE K=512 dot (lane-concat of the 4 position tiles) -----
    h1_cat = jnp.concatenate(
        [h1[0 * NB:1 * NB], h1[1 * NB:2 * NB],
         h1[2 * NB:3 * NB], h1[3 * NB:4 * NB]], axis=1)                   # (NB, 512)
    h2 = jnp.dot(h1_cat, w2_ref[...],
                 preferred_element_type=jnp.float32)                      # (NB, 768)
    h2 = jnp.maximum(h2 + b2_ref[...], 0.0)

    # ----- classifier (lane-padded to NCp) -----
    logits = jnp.dot(h2.astype(jnp.bfloat16), w3_ref[...],
                     preferred_element_type=jnp.float32) + b3_ref[...]    # (NB, NCp)
    out_ref[...] = logits


def aux_head_forward(x, params, *, block_n=128):
    (W1, g1, be1, m1, v1, W2, g2, be2, m2, v2, W3, b3) = params
    N, C, H, W = x.shape
    assert H == 8 and W == 8, "AuxiliaryHeadCIFAR assumes 8x8 input"
    num_classes = W3.shape[0]
    eps = 1e-5

    # ---- fold eval-mode BatchNorm scales into conv weights; keep the bias ----
    s1 = g1 / jnp.sqrt(v1 + eps)                                   # (128,)
    b1 = (be1 - m1 * s1).reshape(1, 128).astype(jnp.float32)
    s2 = g2 / jnp.sqrt(v2 + eps)                                   # (768,)
    b2 = (be2 - m2 * s2).reshape(1, 768).astype(jnp.float32)

    # 1x1 conv weight: BN1 scale AND the 1/25 avg-pool scale folded in
    w1r = (jnp.transpose(W1[:, :, 0, 0])
           * (s1[None, :] * (1.0 / 25.0))).astype(jnp.bfloat16)    # (C, 128)
    # 2x2 conv weight: (out,in,kh,kw) -> (kh,kw,in,out) -> K-concat (512, 768)
    w2r = (jnp.transpose(W2, (2, 3, 1, 0)).reshape(512, 768)
           * s2[None, :]).astype(jnp.bfloat16)                     # (512, 768)

    nc_pad = max(128, _round_up(num_classes, 128))                 # lane-dense output
    w3r = jnp.zeros((768, nc_pad), jnp.float32).at[:, :num_classes].set(
        jnp.transpose(W3)).astype(jnp.bfloat16)                    # (768, NCp)
    b3r = jnp.zeros((1, nc_pad), jnp.float32).at[:, :num_classes].set(
        b3.reshape(1, num_classes))

    # ---- batch tiling: NB samples per grid step ----
    NB = min(block_n, _round_up(N, 8))
    if N > 8:                      # v7x: give the parallel axis >=2 steps (2 TCs)
        NB = min(NB, _round_up((N + 1) // 2, 8))
    # keep the double-buffered bf16 activation block well under v7x's 64 MiB VMEM
    while NB > 8 and 2 * (64 * NB * C * 2) > (24 << 20):
        NB //= 2
    NB = max(8, (NB // 8) * 8)
    n_pad = _round_up(N, NB)
    grid = (n_pad // NB,)

    # (N, C, 8, 8) -> (64, N, C): spatial-major, batch on sublanes, channels on lanes
    x_r = jnp.transpose(x, (2, 3, 0, 1)).reshape(H * W, N, C)
    if n_pad != N:
        x_r = jnp.pad(x_r, ((0, 0), (0, n_pad - N), (0, 0)))
    x_r = x_r.astype(jnp.bfloat16)                                 # halve the dominant DMA

    # ---- explicit VMEM budget: double-buffered blocks + intermediates + headroom ----
    act_blk = 64 * NB * C * 2
    w_blk = (C * 128 + 512 * 768 + 768 * nc_pad) * 2 + (128 + 768 + nc_pad) * 4
    out_blk = NB * nc_pad * 4
    inter = NB * C * 4 * 16 + 4 * NB * 128 * 4 + NB * 512 * 2 + NB * 768 * 4
    vmem_limit = 2 * (act_blk + w_blk + out_blk) + inter + (8 << 20)
    vmem_limit = int(min(max(vmem_limit, 32 << 20), 100 << 20))

    flops = int(n_pad * (64 * C + 150 * C                          # relu + pooling adds
                         + 2 * 4 * C * 128                         # 1x1 conv
                         + 2 * 512 * 768                           # 2x2 conv
                         + 2 * 768 * nc_pad))                      # classifier
    bytes_accessed = int(n_pad * 64 * C * 2 + n_pad * nc_pad * 4
                         + (C * 128 + 512 * 768 + 768 * nc_pad) * 2
                         + (128 + 768 + nc_pad) * 4)

    grid_spec = pltpu.PrefetchScalarGridSpec(
        num_scalar_prefetch=0,
        grid=grid,
        in_specs=[
            pl.BlockSpec((64, NB, C), lambda i: (0, i, 0)),        # activations (bf16)
            pl.BlockSpec((C, 128), lambda i: (0, 0)),              # w1 (constant block)
            pl.BlockSpec((1, 128), lambda i: (0, 0)),              # b1
            pl.BlockSpec((512, 768), lambda i: (0, 0)),            # w2 (K-concat)
            pl.BlockSpec((1, 768), lambda i: (0, 0)),              # b2
            pl.BlockSpec((768, nc_pad), lambda i: (0, 0)),         # w3
            pl.BlockSpec((1, nc_pad), lambda i: (0, 0)),           # b3
        ],
        out_specs=pl.BlockSpec((NB, nc_pad), lambda i: (i, 0)),
    )

    out = pl.pallas_call(
        aux_head_kernel,
        out_shape=jax.ShapeDtypeStruct((n_pad, nc_pad), jnp.float32),
        grid_spec=grid_spec,
        compiler_params=pltpu.CompilerParams(
            dimension_semantics=("parallel",),
            vmem_limit_bytes=vmem_limit),
        cost_estimate=pl.CostEstimate(flops=flops, transcendentals=0,
                                      bytes_accessed=bytes_accessed),
    )(x_r, w1r, b1, w2r, b2, w3r, b3r)
    return out[:N, :num_classes]


def aux_head_reference(x, params):
    """Pure-JAX reference matching PyTorch NCHW semantics (eval-mode BN), all f32."""
    (W1, g1, be1, m1, v1, W2, g2, be2, m2, v2, W3, b3) = params
    eps = 1e-5
    h = jnp.maximum(x, 0.0)
    h = jax.lax.reduce_window(h, 0.0, jax.lax.add,
                              (1, 1, 5, 5), (1, 1, 3, 3), 'VALID') / 25.0
    h = jax.lax.conv_general_dilated(h, W1, (1, 1), 'VALID',
                                     dimension_numbers=('NCHW', 'OIHW', 'NCHW'))
    h = (h - m1[None, :, None, None]) / jnp.sqrt(v1 + eps)[None, :, None, None]
    h = h * g1[None, :, None, None] + be1[None, :, None, None]
    h = jnp.maximum(h, 0.0)
    h = jax.lax.conv_general_dilated(h, W2, (1, 1), 'VALID',
                                     dimension_numbers=('NCHW', 'OIHW', 'NCHW'))
    h = (h - m2[None, :, None, None]) / jnp.sqrt(v2 + eps)[None, :, None, None]
    h = h * g2[None, :, None, None] + be2[None, :, None, None]
    h = jnp.maximum(h, 0.0)
    h = h.reshape(h.shape[0], -1)
    return h @ W3.T + b3


if __name__ == "__main__":
    N, C, num_classes = 2, 4, 10
    key = jax.random.PRNGKey(0)
    ks = jax.random.split(key, 9)

    x = jax.random.normal(ks[0], (N, C, 8, 8), jnp.float32)

    W1 = jax.random.normal(ks[1], (128, C, 1, 1), jnp.float32) * 0.1
    g1 = 1.0 + 0.1 * jax.random.normal(ks[2], (128,), jnp.float32)
    be1 = 0.1 * jax.random.normal(ks[3], (128,), jnp.float32)
    m1 = jnp.zeros((128,), jnp.float32)
    v1 = jnp.ones((128,), jnp.float32)

    W2 = jax.random.normal(ks[4], (768, 128, 2, 2), jnp.float32) * 0.05
    g2 = 1.0 + 0.1 * jax.random.normal(ks[5], (768,), jnp.float32)
    be2 = 0.1 * jax.random.normal(ks[6], (768,), jnp.float32)
    m2 = jnp.zeros((768,), jnp.float32)
    v2 = jnp.ones((768,), jnp.float32)

    W3 = jax.random.normal(ks[7], (num_classes, 768), jnp.float32) * 0.05
    b3 = 0.1 * jax.random.normal(ks[8], (num_classes,), jnp.float32)

    params = (W1, g1, be1, m1, v1, W2, g2, be2, m2, v2, W3, b3)

    out = jax.block_until_ready(aux_head_forward(x, params))
    ref = jax.block_until_ready(aux_head_reference(x, params))

    assert out.shape == (N, num_classes)
    # bf16 activations + bf16 pooling partial sums + bf16 matmul operands
    # (f32 accumulation) -> slightly loosened tolerance vs. the pure-f32 reference.
    np.testing.assert_allclose(np.asarray(out), np.asarray(ref), rtol=3e-2, atol=3e-2)
    print("KERNEL_OK")
</pallas_src>

<mosaic_0001>
module attributes {stable_mosaic.version = 11 : i64} {
  func.func @aux_head_kernel(%arg0: i32, %arg1: memref<64x8x4xbf16, #tpu.memory_space<vmem>>, %arg2: memref<4x128xbf16, #tpu.memory_space<vmem>>, %arg3: memref<1x128xf32, #tpu.memory_space<vmem>>, %arg4: memref<512x768xbf16, #tpu.memory_space<vmem>>, %arg5: memref<1x768xf32, #tpu.memory_space<vmem>>, %arg6: memref<768x128xbf16, #tpu.memory_space<vmem>>, %arg7: memref<1x128xf32, #tpu.memory_space<vmem>>, %arg8: memref<8x128xf32, #tpu.memory_space<vmem>>) attributes {dimension_semantics = [#tpu.dimension_semantics<parallel>], iteration_bounds = array<i64: 1>, scalar_prefetch = 0 : i64, scratch_operands = 0 : i64, tpu.core_type = #tpu.core_type<tc>, window_params = [{transform_indices = @transform_0, window_bounds = array<i64: 64, 8, 4>}, {pipeline_mode = #tpu.pipeline_mode<synchronous>, transform_indices = @transform_1, window_bounds = array<i64: 4, 128>}, {pipeline_mode = #tpu.pipeline_mode<synchronous>, transform_indices = @transform_2, window_bounds = array<i64: 1, 128>}, {pipeline_mode = #tpu.pipeline_mode<synchronous>, transform_indices = @transform_3, window_bounds = array<i64: 512, 768>}, {pipeline_mode = #tpu.pipeline_mode<synchronous>, transform_indices = @transform_4, window_bounds = array<i64: 1, 768>}, {pipeline_mode = #tpu.pipeline_mode<synchronous>, transform_indices = @transform_5, window_bounds = array<i64: 768, 128>}, {pipeline_mode = #tpu.pipeline_mode<synchronous>, transform_indices = @transform_6, window_bounds = array<i64: 1, 128>}, {transform_indices = @transform_7, window_bounds = array<i64: 8, 128>}]} {
    %c0 = arith.constant 0 : index
    %c0_0 = arith.constant 0 : index
    %c0_1 = arith.constant 0 : index
    %0 = vector.load %arg1[%c0, %c0_0, %c0_1] : memref<64x8x4xbf16, #tpu.memory_space<vmem>>, vector<1x8x4xbf16>
    %1 = vector.shape_cast %0 : vector<1x8x4xbf16> to vector<8x4xbf16>
    %cst = arith.constant 0.000000e+00 : bf16
    %2 = vector.broadcast %cst : bf16 to vector<8x4xbf16>
    %3 = arith.maximumf %1, %2 : vector<8x4xbf16>
    %c1 = arith.constant 1 : index
    %c0_2 = arith.constant 0 : index
    %c0_3 = arith.constant 0 : index
    %4 = vector.load %arg1[%c1, %c0_2, %c0_3] : memref<64x8x4xbf16, #tpu.memory_space<vmem>>, vector<1x8x4xbf16>
    %5 = vector.shape_cast %4 : vector<1x8x4xbf16> to vector<8x4xbf16>
    %cst_4 = arith.constant 0.000000e+00 : bf16
    %6 = vector.broadcast %cst_4 : bf16 to vector<8x4xbf16>
    %7 = arith.maximumf %5, %6 : vector<8x4xbf16>
    %c2 = arith.constant 2 : index
    %c0_5 = arith.constant 0 : index
    %c0_6 = arith.constant 0 : index
    %8 = vector.load %arg1[%c2, %c0_5, %c0_6] : memref<64x8x4xbf16, #tpu.memory_space<vmem>>, vector<1x8x4xbf16>
    %9 = vector.shape_cast %8 : vector<1x8x4xbf16> to vector<8x4xbf16>
    %cst_7 = arith.constant 0.000000e+00 : bf16
    %10 = vector.broadcast %cst_7 : bf16 to vector<8x4xbf16>
    %11 = arith.maximumf %9, %10 : vector<8x4xbf16>
    %c3 = arith.constant 3 : index
    %c0_8 = arith.constant 0 : index
    %c0_9 = arith.constant 0 : index
    %12 = vector.load %arg1[%c3, %c0_8, %c0_9] : memref<64x8x4xbf16, #tpu.memory_space<vmem>>, vector<1x8x4xbf16>
    %13 = vector.shape_cast %12 : vector<1x8x4xbf16> to vector<8x4xbf16>
    %cst_10 = arith.constant 0.000000e+00 : bf16
    %14 = vector.broadcast %cst_10 : bf16 to vector<8x4xbf16>
    %15 = arith.maximumf %13, %14 : vector<8x4xbf16>
    %c4 = arith.constant 4 : index
    %c0_11 = arith.constant 0 : index
    %c0_12 = arith.constant 0 : index
    %16 = vector.load %arg1[%c4, %c0_11, %c0_12] : memref<64x8x4xbf16, #tpu.memory_space<vmem>>, vector<1x8x4xbf16>
    %17 = vector.shape_cast %16 : vector<1x8x4xbf16> to vector<8x4xbf16>
    %cst_13 = arith.constant 0.000000e+00 : bf16
    %18 = vector.broadcast %cst_13 : bf16 to vector<8x4xbf16>
    %19 = arith.maximumf %17, %18 : vector<8x4xbf16>
    %c5 = arith.constant 5 : index
    %c0_14 = arith.constant 0 : index
    %c0_15 = arith.constant 0 : index
    %20 = vector.load %arg1[%c5, %c0_14, %c0_15] : memref<64x8x4xbf16, #tpu.memory_space<vmem>>, vector<1x8x4xbf16>
    %21 = vector.shape_cast %20 : vector<1x8x4xbf16> to vector<8x4xbf16>
    %cst_16 = arith.constant 0.000000e+00 : bf16
    %22 = vector.broadcast %cst_16 : bf16 to vector<8x4xbf16>
    %23 = arith.maximumf %21, %22 : vector<8x4xbf16>
    %c6 = arith.constant 6 : index
    %c0_17 = arith.constant 0 : index
    %c0_18 = arith.constant 0 : index
    %24 = vector.load %arg1[%c6, %c0_17, %c0_18] : memref<64x8x4xbf16, #tpu.memory_space<vmem>>, vector<1x8x4xbf16>
    %25 = vector.shape_cast %24 : vector<1x8x4xbf16> to vector<8x4xbf16>
    %cst_19 = arith.constant 0.000000e+00 : bf16
    %26 = vector.broadcast %cst_19 : bf16 to vector<8x4xbf16>
    %27 = arith.maximumf %25, %26 : vector<8x4xbf16>
    %c7 = arith.constant 7 : index
    %c0_20 = arith.constant 0 : index
    %c0_21 = arith.constant 0 : index
    %28 = vector.load %arg1[%c7, %c0_20, %c0_21] : memref<64x8x4xbf16, #tpu.memory_space<vmem>>, vector<1x8x4xbf16>
    %29 = vector.shape_cast %28 : vector<1x8x4xbf16> to vector<8x4xbf16>
    %cst_22 = arith.constant 0.000000e+00 : bf16
    %30 = vector.broadcast %cst_22 : bf16 to vector<8x4xbf16>
    %31 = arith.maximumf %29, %30 : vector<8x4xbf16>
    %32 = arith.addf %15, %19 : vector<8x4xbf16>
    %33 = arith.addf %3, %7 : vector<8x4xbf16>
    %34 = arith.addf %33, %11 : vector<8x4xbf16>
    %35 = arith.addf %34, %32 : vector<8x4xbf16>
    %36 = arith.addf %23, %27 : vector<8x4xbf16>
    %37 = arith.addf %32, %36 : vector<8x4xbf16>
    %38 = arith.addf %37, %31 : vector<8x4xbf16>
    %39 = arith.extf %35 : vector<8x4xbf16> to vector<8x4xf32>
    %40 = arith.extf %38 : vector<8x4xbf16> to vector<8x4xf32>
    %c8 = arith.constant 8 : index
    %c0_23 = arith.constant 0 : index
    %c0_24 = arith.constant 0 : index
    %41 = vector.load %arg1[%c8, %c0_23, %c0_24] : memref<64x8x4xbf16, #tpu.memory_space<vmem>>, vector<1x8x4xbf16>
    %42 = vector.shape_cast %41 : vector<1x8x4xbf16> to vector<8x4xbf16>
    %cst_25 = arith.constant 0.000000e+00 : bf16
    %43 = vector.broadcast %cst_25 : bf16 to vector<8x4xbf16>
    %44 = arith.maximumf %42, %43 : vector<8x4xbf16>
    %c9 = arith.constant 9 : index
    %c0_26 = arith.constant 0 : index
    %c0_27 = arith.constant 0 : index
    %45 = vector.load %arg1[%c9, %c0_26, %c0_27] : memref<64x8x4xbf16, #tpu.memory_space<vmem>>, vector<1x8x4xbf16>
    %46 = vector.shape_cast %45 : vector<1x8x4xbf16> to vector<8x4xbf16>
    %cst_28 = arith.constant 0.000000e+00 : bf16
    %47 = vector.broadcast %cst_28 : bf16 to vector<8x4xbf16>
    %48 = arith.maximumf %46, %47 : vector<8x4xbf16>
    %c10 = arith.constant 10 : index
    %c0_29 = arith.constant 0 : index
    %c0_30 = arith.constant 0 : index
    %49 = vector.load %arg1[%c10, %c0_29, %c0_30] : memref<64x8x4xbf16, #tpu.memory_space<vmem>>, vector<1x8x4xbf16>
    %50 = vector.shape_cast %49 : vector<1x8x4xbf16> to vector<8x4xbf16>
    %cst_31 = arith.constant 0.000000e+00 : bf16
    %51 = vector.broadcast %cst_31 : bf16 to vector<8x4xbf16>
    %52 = arith.maximumf %50, %51 : vector<8x4xbf16>
    %c11 = arith.constant 11 : index
    %c0_32 = arith.constant 0 : index
    %c0_33 = arith.constant 0 : index
    %53 = vector.load %arg1[%c11, %c0_32, %c0_33] : memref<64x8x4xbf16, #tpu.memory_space<vmem>>, vector<1x8x4xbf16>
    %54 = vector.shape_cast %53 : vector<1x8x4xbf16> to vector<8x4xbf16>
    %cst_34 = arith.constant 0.000000e+00 : bf16
    %55 = vector.broadcast %cst_34 : bf16 to vector<8x4xbf16>
    %56 = arith.maximumf %54, %55 : vector<8x4xbf16>
    %c12 = arith.constant 12 : index
    %c0_35 = arith.constant 0 : index
    %c0_36 = arith.constant 0 : index
    %57 = vector.load %arg1[%c12, %c0_35, %c0_36] : memref<64x8x4xbf16, #tpu.memory_space<vmem>>, vector<1x8x4xbf16>
    %58 = vector.shape_cast %57 : vector<1x8x4xbf16> to vector<8x4xbf16>
    %cst_37 = arith.constant 0.000000e+00 : bf16
    %59 = vector.broadcast %cst_37 : bf16 to vector<8x4xbf16>
    %60 = arith.maximumf %58, %59 : vector<8x4xbf16>
    %c13 = arith.constant 13 : index
    %c0_38 = arith.constant 0 : index
    %c0_39 = arith.constant 0 : index
    %61 = vector.load %arg1[%c13, %c0_38, %c0_39] : memref<64x8x4xbf16, #tpu.memory_space<vmem>>, vector<1x8x4xbf16>
    %62 = vector.shape_cast %61 : vector<1x8x4xbf16> to vector<8x4xbf16>
    %cst_40 = arith.constant 0.000000e+00 : bf16
    %63 = vector.broadcast %cst_40 : bf16 to vector<8x4xbf16>
    %64 = arith.maximumf %62, %63 : vector<8x4xbf16>
    %c14 = arith.constant 14 : index
    %c0_41 = arith.constant 0 : index
    %c0_42 = arith.constant 0 : index
    %65 = vector.load %arg1[%c14, %c0_41, %c0_42] : memref<64x8x4xbf16, #tpu.memory_space<vmem>>, vector<1x8x4xbf16>
    %66 = vector.shape_cast %65 : vector<1x8x4xbf16> to vector<8x4xbf16>
    %cst_43 = arith.constant 0.000000e+00 : bf16
    %67 = vector.broadcast %cst_43 : bf16 to vector<8x4xbf16>
    %68 = arith.maximumf %66, %67 : vector<8x4xbf16>
    %c15 = arith.constant 15 : index
    %c0_44 = arith.constant 0 : index
    %c0_45 = arith.constant 0 : index
    %69 = vector.load %arg1[%c15, %c0_44, %c0_45] : memref<64x8x4xbf16, #tpu.memory_space<vmem>>, vector<1x8x4xbf16>
    %70 = vector.shape_cast %69 : vector<1x8x4xbf16> to vector<8x4xbf16>
    %cst_46 = arith.constant 0.000000e+00 : bf16
    %71 = vector.broadcast %cst_46 : bf16 to vector<8x4xbf16>
    %72 = arith.maximumf %70, %71 : vector<8x4xbf16>
    %73 = arith.addf %56, %60 : vector<8x4xbf16>
    %74 = arith.addf %44, %48 : vector<8x4xbf16>
    %75 = arith.addf %74, %52 : vector<8x4xbf16>
    %76 = arith.addf %75, %73 : vector<8x4xbf16>
    %77 = arith.addf %64, %68 : vector<8x4xbf16>
    %78 = arith.addf %73, %77 : vector<8x4xbf16>
    %79 = arith.addf %78, %72 : vector<8x4xbf16>
    %80 = arith.extf %76 : vector<8x4xbf16> to vector<8x4xf32>
    %81 = arith.extf %79 : vector<8x4xbf16> to vector<8x4xf32>
    %82 = arith.addf %39, %80 : vector<8x4xf32>
    %83 = arith.addf %40, %81 : vector<8x4xf32>
    %c16 = arith.constant 16 : index
    %c0_47 = arith.constant 0 : index
    %c0_48 = arith.constant 0 : index
    %84 = vector.load %arg1[%c16, %c0_47, %c0_48] : memref<64x8x4xbf16, #tpu.memory_space<vmem>>, vector<1x8x4xbf16>
    %85 = vector.shape_cast %84 : vector<1x8x4xbf16> to vector<8x4xbf16>
    %cst_49 = arith.constant 0.000000e+00 : bf16
    %86 = vector.broadcast %cst_49 : bf16 to vector<8x4xbf16>
    %87 = arith.maximumf %85, %86 : vector<8x4xbf16>
    %c17 = arith.constant 17 : index
    %c0_50 = arith.constant 0 : index
    %c0_51 = arith.constant 0 : index
    %88 = vector.load %arg1[%c17, %c0_50, %c0_51] : memref<64x8x4xbf16, #tpu.memory_space<vmem>>, vector<1x8x4xbf16>
    %89 = vector.shape_cast %88 : vector<1x8x4xbf16> to vector<8x4xbf16>
    %cst_52 = arith.constant 0.000000e+00 : bf16
    %90 = vector.broadcast %cst_52 : bf16 to vector<8x4xbf16>
    %91 = arith.maximumf %89, %90 : vector<8x4xbf16>
    %c18 = arith.constant 18 : index
    %c0_53 = arith.constant 0 : index
    %c0_54 = arith.constant 0 : index
    %92 = vector.load %arg1[%c18, %c0_53, %c0_54] : memref<64x8x4xbf16, #tpu.memory_space<vmem>>, vector<1x8x4xbf16>
    %93 = vector.shape_cast %92 : vector<1x8x4xbf16> to vector<8x4xbf16>
    %cst_55 = arith.constant 0.000000e+00 : bf16
    %94 = vector.broadcast %cst_55 : bf16 to vector<8x4xbf16>
    %95 = arith.maximumf %93, %94 : vector<8x4xbf16>
    %c19 = arith.constant 19 : index
    %c0_56 = arith.constant 0 : index
    %c0_57 = arith.constant 0 : index
    %96 = vector.load %arg1[%c19, %c0_56, %c0_57] : memref<64x8x4xbf16, #tpu.memory_space<vmem>>, vector<1x8x4xbf16>
    %97 = vector.shape_cast %96 : vector<1x8x4xbf16> to vector<8x4xbf16>
    %cst_58 = arith.constant 0.000000e+00 : bf16
    %98 = vector.broadcast %cst_58 : bf16 to vector<8x4xbf16>
    %99 = arith.maximumf %97, %98 : vector<8x4xbf16>
    %c20 = arith.constant 20 : index
    %c0_59 = arith.constant 0 : index
    %c0_60 = arith.constant 0 : index
    %100 = vector.load %arg1[%c20, %c0_59, %c0_60] : memref<64x8x4xbf16, #tpu.memory_space<vmem>>, vector<1x8x4xbf16>
    %101 = vector.shape_cast %100 : vector<1x8x4xbf16> to vector<8x4xbf16>
    %cst_61 = arith.constant 0.000000e+00 : bf16
    %102 = vector.broadcast %cst_61 : bf16 to vector<8x4xbf16>
    %103 = arith.maximumf %101, %102 : vector<8x4xbf16>
    %c21 = arith.constant 21 : index
    %c0_62 = arith.constant 0 : index
    %c0_63 = arith.constant 0 : index
    %104 = vector.load %arg1[%c21, %c0_62, %c0_63] : memref<64x8x4xbf16, #tpu.memory_space<vmem>>, vector<1x8x4xbf16>
    %105 = vector.shape_cast %104 : vector<1x8x4xbf16> to vector<8x4xbf16>
    %cst_64 = arith.constant 0.000000e+00 : bf16
    %106 = vector.broadcast %cst_64 : bf16 to vector<8x4xbf16>
    %107 = arith.maximumf %105, %106 : vector<8x4xbf16>
    %c22 = arith.constant 22 : index
    %c0_65 = arith.constant 0 : index
    %c0_66 = arith.constant 0 : index
    %108 = vector.load %arg1[%c22, %c0_65, %c0_66] : memref<64x8x4xbf16, #tpu.memory_space<vmem>>, vector<1x8x4xbf16>
    %109 = vector.shape_cast %108 : vector<1x8x4xbf16> to vector<8x4xbf16>
    %cst_67 = arith.constant 0.000000e+00 : bf16
    %110 = vector.broadcast %cst_67 : bf16 to vector<8x4xbf16>
    %111 = arith.maximumf %109, %110 : vector<8x4xbf16>
    %c23 = arith.constant 23 : index
    %c0_68 = arith.constant 0 : index
    %c0_69 = arith.constant 0 : index
    %112 = vector.load %arg1[%c23, %c0_68, %c0_69] : memref<64x8x4xbf16, #tpu.memory_space<vmem>>, vector<1x8x4xbf16>
    %113 = vector.shape_cast %112 : vector<1x8x4xbf16> to vector<8x4xbf16>
    %cst_70 = arith.constant 0.000000e+00 : bf16
    %114 = vector.broadcast %cst_70 : bf16 to vector<8x4xbf16>
    %115 = arith.maximumf %113, %114 : vector<8x4xbf16>
    %116 = arith.addf %99, %103 : vector<8x4xbf16>
    %117 = arith.addf %87, %91 : vector<8x4xbf16>
    %118 = arith.addf %117, %95 : vector<8x4xbf16>
    %119 = arith.addf %118, %116 : vector<8x4xbf16>
    %120 = arith.addf %107, %111 : vector<8x4xbf16>
    %121 = arith.addf %116, %120 : vector<8x4xbf16>
    %122 = arith.addf %121, %115 : vector<8x4xbf16>
    %123 = arith.extf %119 : vector<8x4xbf16> to vector<8x4xf32>
    %124 = arith.extf %122 : vector<8x4xbf16> to vector<8x4xf32>
    %125 = arith.addf %82, %123 : vector<8x4xf32>
    %126 = arith.addf %83, %124 : vector<8x4xf32>
    %c24 = arith.constant 24 : index
    %c0_71 = arith.constant 0 : index
    %c0_72 = arith.constant 0 : index
    %127 = vector.load %arg1[%c24, %c0_71, %c0_72] : memref<64x8x4xbf16, #tpu.memory_space<vmem>>, vector<1x8x4xbf16>
    %128 = vector.shape_cast %127 : vector<1x8x4xbf16> to vector<8x4xbf16>
    %cst_73 = arith.constant 0.000000e+00 : bf16
    %129 = vector.broadcast %cst_73 : bf16 to vector<8x4xbf16>
    %130 = arith.maximumf %128, %129 : vector<8x4xbf16>
    %c25 = arith.constant 25 : index
    %c0_74 = arith.constant 0 : index
    %c0_75 = arith.constant 0 : index
    %131 = vector.load %arg1[%c25, %c0_74, %c0_75] : memref<64x8x4xbf16, #tpu.memory_space<vmem>>, vector<1x8x4xbf16>
    %132 = vector.shape_cast %131 : vector<1x8x4xbf16> to vector<8x4xbf16>
    %cst_76 = arith.constant 0.000000e+00 : bf16
    %133 = vector.broadcast %cst_76 : bf16 to vector<8x4xbf16>
    %134 = arith.maximumf %132, %133 : vector<8x4xbf16>
    %c26 = arith.constant 26 : index
    %c0_77 = arith.constant 0 : index
    %c0_78 = arith.constant 0 : index
    %135 = vector.load %arg1[%c26, %c0_77, %c0_78] : memref<64x8x4xbf16, #tpu.memory_space<vmem>>, vector<1x8x4xbf16>
    %136 = vector.shape_cast %135 : vector<1x8x4xbf16> to vector<8x4xbf16>
    %cst_79 = arith.constant 0.000000e+00 : bf16
    %137 = vector.broadcast %cst_79 : bf16 to vector<8x4xbf16>
    %138 = arith.maximumf %136, %137 : vector<8x4xbf16>
    %c27 = arith.constant 27 : index
    %c0_80 = arith.constant 0 : index
    %c0_81 = arith.constant 0 : index
    %139 = vector.load %arg1[%c27, %c0_80, %c0_81] : memref<64x8x4xbf16, #tpu.memory_space<vmem>>, vector<1x8x4xbf16>
    %140 = vector.shape_cast %139 : vector<1x8x4xbf16> to vector<8x4xbf16>
    %cst_82 = arith.constant 0.000000e+00 : bf16
    %141 = vector.broadcast %cst_82 : bf16 to vector<8x4xbf16>
    %142 = arith.maximumf %140, %141 : vector<8x4xbf16>
    %c28 = arith.constant 28 : index
    %c0_83 = arith.constant 0 : index
    %c0_84 = arith.constant 0 : index
    %143 = vector.load %arg1[%c28, %c0_83, %c0_84] : memref<64x8x4xbf16, #tpu.memory_space<vmem>>, vector<1x8x4xbf16>
    %144 = vector.shape_cast %143 : vector<1x8x4xbf16> to vector<8x4xbf16>
    %cst_85 = arith.constant 0.000000e+00 : bf16
    %145 = vector.broadcast %cst_85 : bf16 to vector<8x4xbf16>
    %146 = arith.maximumf %144, %145 : vector<8x4xbf16>
    %c29 = arith.constant 29 : index
    %c0_86 = arith.constant 0 : index
    %c0_87 = arith.constant 0 : index
    %147 = vector.load %arg1[%c29, %c0_86, %c0_87] : memref<64x8x4xbf16, #tpu.memory_space<vmem>>, vector<1x8x4xbf16>
    %148 = vector.shape_cast %147 : vector<1x8x4xbf16> to vector<8x4xbf16>
    %cst_88 = arith.constant 0.000000e+00 : bf16
    %149 = vector.broadcast %cst_88 : bf16 to vector<8x4xbf16>
    %150 = arith.maximumf %148, %149 : vector<8x4xbf16>
    %c30 = arith.constant 30 : index
    %c0_89 = arith.constant 0 : index
    %c0_90 = arith.constant 0 : index
    %151 = vector.load %arg1[%c30, %c0_89, %c0_90] : memref<64x8x4xbf16, #tpu.memory_space<vmem>>, vector<1x8x4xbf16>
    %152 = vector.shape_cast %151 : vector<1x8x4xbf16> to vector<8x4xbf16>
    %cst_91 = arith.constant 0.000000e+00 : bf16
    %153 = vector.broadcast %cst_91 : bf16 to vector<8x4xbf16>
    %154 = arith.maximumf %152, %153 : vector<8x4xbf16>
    %c31 = arith.constant 31 : index
    %c0_92 = arith.constant 0 : index
    %c0_93 = arith.constant 0 : index
    %155 = vector.load %arg1[%c31, %c0_92, %c0_93] : memref<64x8x4xbf16, #tpu.memory_space<vmem>>, vector<1x8x4xbf16>
    %156 = vector.shape_cast %155 : vector<1x8x4xbf16> to vector<8x4xbf16>
    %cst_94 = arith.constant 0.000000e+00 : bf16
    %157 = vector.broadcast %cst_94 : bf16 to vector<8x4xbf16>
    %158 = arith.maximumf %156, %157 : vector<8x4xbf16>
    %159 = arith.addf %142, %146 : vector<8x4xbf16>
    %160 = arith.addf %130, %134 : vector<8x4xbf16>
    %161 = arith.addf %160, %138 : vector<8x4xbf16>
    %162 = arith.addf %161, %159 : vector<8x4xbf16>
    %163 = arith.addf %150, %154 : vector<8x4xbf16>
    %164 = arith.addf %159, %163 : vector<8x4xbf16>
    %165 = arith.addf %164, %158 : vector<8x4xbf16>
    %166 = arith.extf %162 : vector<8x4xbf16> to vector<8x4xf32>
    %167 = arith.extf %165 : vector<8x4xbf16> to vector<8x4xf32>
    %168 = arith.addf %125, %166 : vector<8x4xf32>
    %169 = arith.addf %126, %167 : vector<8x4xf32>
    %c32 = arith.constant 32 : index
    %c0_95 = arith.constant 0 : index
    %c0_96 = arith.constant 0 : index
    %170 = vector.load %arg1[%c32, %c0_95, %c0_96] : memref<64x8x4xbf16, #tpu.memory_space<vmem>>, vector<1x8x4xbf16>
    %171 = vector.shape_cast %170 : vector<1x8x4xbf16> to vector<8x4xbf16>
    %cst_97 = arith.constant 0.000000e+00 : bf16
    %172 = vector.broadcast %cst_97 : bf16 to vector<8x4xbf16>
    %173 = arith.maximumf %171, %172 : vector<8x4xbf16>
    %c33 = arith.constant 33 : index
    %c0_98 = arith.constant 0 : index
    %c0_99 = arith.constant 0 : index
    %174 = vector.load %arg1[%c33, %c0_98, %c0_99] : memref<64x8x4xbf16, #tpu.memory_space<vmem>>, vector<1x8x4xbf16>
    %175 = vector.shape_cast %174 : vector<1x8x4xbf16> to vector<8x4xbf16>
    %cst_100 = arith.constant 0.000000e+00 : bf16
    %176 = vector.broadcast %cst_100 : bf16 to vector<8x4xbf16>
    %177 = arith.maximumf %175, %176 : vector<8x4xbf16>
    %c34 = arith.constant 34 : index
    %c0_101 = arith.constant 0 : index
    %c0_102 = arith.constant 0 : index
    %178 = vector.load %arg1[%c34, %c0_101, %c0_102] : memref<64x8x4xbf16, #tpu.memory_space<vmem>>, vector<1x8x4xbf16>
    %179 = vector.shape_cast %178 : vector<1x8x4xbf16> to vector<8x4xbf16>
    %cst_103 = arith.constant 0.000000e+00 : bf16
    %180 = vector.broadcast %cst_103 : bf16 to vector<8x4xbf16>
    %181 = arith.maximumf %179, %180 : vector<8x4xbf16>
    %c35 = arith.constant 35 : index
    %c0_104 = arith.constant 0 : index
    %c0_105 = arith.constant 0 : index
    %182 = vector.load %arg1[%c35, %c0_104, %c0_105] : memref<64x8x4xbf16, #tpu.memory_space<vmem>>, vector<1x8x4xbf16>
    %183 = vector.shape_cast %182 : vector<1x8x4xbf16> to vector<8x4xbf16>
    %cst_106 = arith.constant 0.000000e+00 : bf16
    %184 = vector.broadcast %cst_106 : bf16 to vector<8x4xbf16>
    %185 = arith.maximumf %183, %184 : vector<8x4xbf16>
    %c36 = arith.constant 36 : index
    %c0_107 = arith.constant 0 : index
    %c0_108 = arith.constant 0 : index
    %186 = vector.load %arg1[%c36, %c0_107, %c0_108] : memref<64x8x4xbf16, #tpu.memory_space<vmem>>, vector<1x8x4xbf16>
    %187 = vector.shape_cast %186 : vector<1x8x4xbf16> to vector<8x4xbf16>
    %cst_109 = arith.constant 0.000000e+00 : bf16
    %188 = vector.broadcast %cst_109 : bf16 to vector<8x4xbf16>
    %189 = arith.maximumf %187, %188 : vector<8x4xbf16>
    %c37 = arith.constant 37 : index
    %c0_110 = arith.constant 0 : index
    %c0_111 = arith.constant 0 : index
    %190 = vector.load %arg1[%c37, %c0_110, %c0_111] : memref<64x8x4xbf16, #tpu.memory_space<vmem>>, vector<1x8x4xbf16>
    %191 = vector.shape_cast %190 : vector<1x8x4xbf16> to vector<8x4xbf16>
    %cst_112 = arith.constant 0.000000e+00 : bf16
    %192 = vector.broadcast %cst_112 : bf16 to vector<8x4xbf16>
    %193 = arith.maximumf %191, %192 : vector<8x4xbf16>
    %c38 = arith.constant 38 : index
    %c0_113 = arith.constant 0 : index
    %c0_114 = arith.constant 0 : index
    %194 = vector.load %arg1[%c38, %c0_113, %c0_114] : memref<64x8x4xbf16, #tpu.memory_space<vmem>>, vector<1x8x4xbf16>
    %195 = vector.shape_cast %194 : vector<1x8x4xbf16> to vector<8x4xbf16>
    %cst_115 = arith.constant 0.000000e+00 : bf16
    %196 = vector.broadcast %cst_115 : bf16 to vector<8x4xbf16>
    %197 = arith.maximumf %195, %196 : vector<8x4xbf16>
    %c39 = arith.constant 39 : index
    %c0_116 = arith.constant 0 : index
    %c0_117 = arith.constant 0 : index
    %198 = vector.load %arg1[%c39, %c0_116, %c0_117] : memref<64x8x4xbf16, #tpu.memory_space<vmem>>, vector<1x8x4xbf16>
    %199 = vector.shape_cast %198 : vector<1x8x4xbf16> to vector<8x4xbf16>
    %cst_118 = arith.constant 0.000000e+00 : bf16
    %200 = vector.broadcast %cst_118 : bf16 to vector<8x4xbf16>
    %201 = arith.maximumf %199, %200 : vector<8x4xbf16>
    %202 = arith.addf %185, %189 : vector<8x4xbf16>
    %203 = arith.addf %173, %177 : vector<8x4xbf16>
    %204 = arith.addf %203, %181 : vector<8x4xbf16>
    %205 = arith.addf %204, %202 : vector<8x4xbf16>
    %206 = arith.addf %193, %197 : vector<8x4xbf16>
    %207 = arith.addf %202, %206 : vector<8x4xbf16>
    %208 = arith.addf %207, %201 : vector<8x4xbf16>
    %209 = arith.extf %205 : vector<8x4xbf16> to vector<8x4xf32>
    %210 = arith.extf %208 : vector<8x4xbf16> to vector<8x4xf32>
    %211 = arith.addf %168, %209 : vector<8x4xf32>
    %212 = arith.addf %169, %210 : vector<8x4xf32>
    %213 = arith.addf %166, %209 : vector<8x4xf32>
    %214 = arith.addf %167, %210 : vector<8x4xf32>
    %c40 = arith.constant 40 : index
    %c0_119 = arith.constant 0 : index
    %c0_120 = arith.constant 0 : index
    %215 = vector.load %arg1[%c40, %c0_119, %c0_120] : memref<64x8x4xbf16, #tpu.memory_space<vmem>>, vector<1x8x4xbf16>
    %216 = vector.shape_cast %215 : vector<1x8x4xbf16> to vector<8x4xbf16>
    %cst_121 = arith.constant 0.000000e+00 : bf16
    %217 = vector.broadcast %cst_121 : bf16 to vector<8x4xbf16>
    %218 = arith.maximumf %216, %217 : vector<8x4xbf16>
    %c41 = arith.constant 41 : index
    %c0_122 = arith.constant 0 : index
    %c0_123 = arith.constant 0 : index
    %219 = vector.load %arg1[%c41, %c0_122, %c0_123] : memref<64x8x4xbf16, #tpu.memory_space<vmem>>, vector<1x8x4xbf16>
    %220 = vector.shape_cast %219 : vector<1x8x4xbf16> to vector<8x4xbf16>
    %cst_124 = arith.constant 0.000000e+00 : bf16
    %221 = vector.broadcast %cst_124 : bf16 to vector<8x4xbf16>
    %222 = arith.maximumf %220, %221 : vector<8x4xbf16>
    %c42 = arith.constant 42 : index
    %c0_125 = arith.constant 0 : index
    %c0_126 = arith.constant 0 : index
    %223 = vector.load %arg1[%c42, %c0_125, %c0_126] : memref<64x8x4xbf16, #tpu.memory_space<vmem>>, vector<1x8x4xbf16>
    %224 = vector.shape_cast %223 : vector<1x8x4xbf16> to vector<8x4xbf16>
    %cst_127 = arith.constant 0.000000e+00 : bf16
    %225 = vector.broadcast %cst_127 : bf16 to vector<8x4xbf16>
    %226 = arith.maximumf %224, %225 : vector<8x4xbf16>
    %c43 = arith.constant 43 : index
    %c0_128 = arith.constant 0 : index
    %c0_129 = arith.constant 0 : index
    %227 = vector.load %arg1[%c43, %c0_128, %c0_129] : memref<64x8x4xbf16, #tpu.memory_space<vmem>>, vector<1x8x4xbf16>
    %228 = vector.shape_cast %227 : vector<1x8x4xbf16> to vector<8x4xbf16>
    %cst_130 = arith.constant 0.000000e+00 : bf16
    %229 = vector.broadcast %cst_130 : bf16 to vector<8x4xbf16>
    %230 = arith.maximumf %228, %229 : vector<8x4xbf16>
    %c44 = arith.constant 44 : index
    %c0_131 = arith.constant 0 : index
    %c0_132 = arith.constant 0 : index
    %231 = vector.load %arg1[%c44, %c0_131, %c0_132] : memref<64x8x4xbf16, #tpu.memory_space<vmem>>, vector<1x8x4xbf16>
    %232 = vector.shape_cast %231 : vector<1x8x4xbf16> to vector<8x4xbf16>
    %cst_133 = arith.constant 0.000000e+00 : bf16
    %233 = vector.broadcast %cst_133 : bf16 to vector<8x4xbf16>
    %234 = arith.maximumf %232, %233 : vector<8x4xbf16>
    %c45 = arith.constant 45 : index
    %c0_134 = arith.constant 0 : index
    %c0_135 = arith.constant 0 : index
    %235 = vector.load %arg1[%c45, %c0_134, %c0_135] : memref<64x8x4xbf16, #tpu.memory_space<vmem>>, vector<1x8x4xbf16>
    %236 = vector.shape_cast %235 : vector<1x8x4xbf16> to vector<8x4xbf16>
    %cst_136 = arith.constant 0.000000e+00 : bf16
    %237 = vector.broadcast %cst_136 : bf16 to vector<8x4xbf16>
    %238 = arith.maximumf %236, %237 : vector<8x4xbf16>
    %c46 = arith.constant 46 : index
    %c0_137 = arith.constant 0 : index
    %c0_138 = arith.constant 0 : index
    %239 = vector.load %arg1[%c46, %c0_137, %c0_138] : memref<64x8x4xbf16, #tpu.memory_space<vmem>>, vector<1x8x4xbf16>
    %240 = vector.shape_cast %239 : vector<1x8x4xbf16> to vector<8x4xbf16>
    %cst_139 = arith.constant 0.000000e+00 : bf16
    %241 = vector.broadcast %cst_139 : bf16 to vector<8x4xbf16>
    %242 = arith.maximumf %240, %241 : vector<8x4xbf16>
    %c47 = arith.constant 47 : index
    %c0_140 = arith.constant 0 : index
    %c0_141 = arith.constant 0 : index
    %243 = vector.load %arg1[%c47, %c0_140, %c0_141] : memref<64x8x4xbf16, #tpu.memory_space<vmem>>, vector<1x8x4xbf16>
    %244 = vector.shape_cast %243 : vector<1x8x4xbf16> to vector<8x4xbf16>
    %cst_142 = arith.constant 0.000000e+00 : bf16
    %245 = vector.broadcast %cst_142 : bf16 to vector<8x4xbf16>
    %246 = arith.maximumf %244, %245 : vector<8x4xbf16>
    %247 = arith.addf %230, %234 : vector<8x4xbf16>
    %248 = arith.addf %218, %222 : vector<8x4xbf16>
    %249 = arith.addf %248, %226 : vector<8x4xbf16>
    %250 = arith.addf %249, %247 : vector<8x4xbf16>
    %251 = arith.addf %238, %242 : vector<8x4xbf16>
    %252 = arith.addf %247, %251 : vector<8x4xbf16>
    %253 = arith.addf %252, %246 : vector<8x4xbf16>
    %254 = arith.extf %250 : vector<8x4xbf16> to vector<8x4xf32>
    %255 = arith.extf %253 : vector<8x4xbf16> to vector<8x4xf32>
    %256 = arith.addf %213, %254 : vector<8x4xf32>
    %257 = arith.addf %214, %255 : vector<8x4xf32>
    %c48 = arith.constant 48 : index
    %c0_143 = arith.constant 0 : index
    %c0_144 = arith.constant 0 : index
    %258 = vector.load %arg1[%c48, %c0_143, %c0_144] : memref<64x8x4xbf16, #tpu.memory_space<vmem>>, vector<1x8x4xbf16>
    %259 = vector.shape_cast %258 : vector<1x8x4xbf16> to vector<8x4xbf16>
    %cst_145 = arith.constant 0.000000e+00 : bf16
    %260 = vector.broadcast %cst_145 : bf16 to vector<8x4xbf16>
    %261 = arith.maximumf %259, %260 : vector<8x4xbf16>
    %c49 = arith.constant 49 : index
    %c0_146 = arith.constant 0 : index
    %c0_147 = arith.constant 0 : index
    %262 = vector.load %arg1[%c49, %c0_146, %c0_147] : memref<64x8x4xbf16, #tpu.memory_space<vmem>>, vector<1x8x4xbf16>
    %263 = vector.shape_cast %262 : vector<1x8x4xbf16> to vector<8x4xbf16>
    %cst_148 = arith.constant 0.000000e+00 : bf16
    %264 = vector.broadcast %cst_148 : bf16 to vector<8x4xbf16>
    %265 = arith.maximumf %263, %264 : vector<8x4xbf16>
    %c50 = arith.constant 50 : index
    %c0_149 = arith.constant 0 : index
    %c0_150 = arith.constant 0 : index
    %266 = vector.load %arg1[%c50, %c0_149, %c0_150] : memref<64x8x4xbf16, #tpu.memory_space<vmem>>, vector<1x8x4xbf16>
    %267 = vector.shape_cast %266 : vector<1x8x4xbf16> to vector<8x4xbf16>
    %cst_151 = arith.constant 0.000000e+00 : bf16
    %268 = vector.broadcast %cst_151 : bf16 to vector<8x4xbf16>
    %269 = arith.maximumf %267, %268 : vector<8x4xbf16>
    %c51 = arith.constant 51 : index
    %c0_152 = arith.constant 0 : index
    %c0_153 = arith.constant 0 : index
    %270 = vector.load %arg1[%c51, %c0_152, %c0_153] : memref<64x8x4xbf16, #tpu.memory_space<vmem>>, vector<1x8x4xbf16>
    %271 = vector.shape_cast %270 : vector<1x8x4xbf16> to vector<8x4xbf16>
    %cst_154 = arith.constant 0.000000e+00 : bf16
    %272 = vector.broadcast %cst_154 : bf16 to vector<8x4xbf16>
    %273 = arith.maximumf %271, %272 : vector<8x4xbf16>
    %c52 = arith.constant 52 : index
    %c0_155 = arith.constant 0 : index
    %c0_156 = arith.constant 0 : index
    %274 = vector.load %arg1[%c52, %c0_155, %c0_156] : memref<64x8x4xbf16, #tpu.memory_space<vmem>>, vector<1x8x4xbf16>
    %275 = vector.shape_cast %274 : vector<1x8x4xbf16> to vector<8x4xbf16>
    %cst_157 = arith.constant 0.000000e+00 : bf16
    %276 = vector.broadcast %cst_157 : bf16 to vector<8x4xbf16>
    %277 = arith.maximumf %275, %276 : vector<8x4xbf16>
    %c53 = arith.constant 53 : index
    %c0_158 = arith.constant 0 : index
    %c0_159 = arith.constant 0 : index
    %278 = vector.load %arg1[%c53, %c0_158, %c0_159] : memref<64x8x4xbf16, #tpu.memory_space<vmem>>, vector<1x8x4xbf16>
    %279 = vector.shape_cast %278 : vector<1x8x4xbf16> to vector<8x4xbf16>
    %cst_160 = arith.constant 0.000000e+00 : bf16
    %280 = vector.broadcast %cst_160 : bf16 to vector<8x4xbf16>
    %281 = arith.maximumf %279, %280 : vector<8x4xbf16>
    %c54 = arith.constant 54 : index
    %c0_161 = arith.constant 0 : index
    %c0_162 = arith.constant 0 : index
    %282 = vector.load %arg1[%c54, %c0_161, %c0_162] : memref<64x8x4xbf16, #tpu.memory_space<vmem>>, vector<1x8x4xbf16>
    %283 = vector.shape_cast %282 : vector<1x8x4xbf16> to vector<8x4xbf16>
    %cst_163 = arith.constant 0.000000e+00 : bf16
    %284 = vector.broadcast %cst_163 : bf16 to vector<8x4xbf16>
    %285 = arith.maximumf %283, %284 : vector<8x4xbf16>
    %c55 = arith.constant 55 : index
    %c0_164 = arith.constant 0 : index
    %c0_165 = arith.constant 0 : index
    %286 = vector.load %arg1[%c55, %c0_164, %c0_165] : memref<64x8x4xbf16, #tpu.memory_space<vmem>>, vector<1x8x4xbf16>
    %287 = vector.shape_cast %286 : vector<1x8x4xbf16> to vector<8x4xbf16>
    %cst_166 = arith.constant 0.000000e+00 : bf16
    %288 = vector.broadcast %cst_166 : bf16 to vector<8x4xbf16>
    %289 = arith.maximumf %287, %288 : vector<8x4xbf16>
    %290 = arith.addf %273, %277 : vector<8x4xbf16>
    %291 = arith.addf %261, %265 : vector<8x4xbf16>
    %292 = arith.addf %291, %269 : vector<8x4xbf16>
    %293 = arith.addf %292, %290 : vector<8x4xbf16>
    %294 = arith.addf %281, %285 : vector<8x4xbf16>
    %295 = arith.addf %290, %294 : vector<8x4xbf16>
    %296 = arith.addf %295, %289 : vector<8x4xbf16>
    %297 = arith.extf %293 : vector<8x4xbf16> to vector<8x4xf32>
    %298 = arith.extf %296 : vector<8x4xbf16> to vector<8x4xf32>
    %299 = arith.addf %256, %297 : vector<8x4xf32>
    %300 = arith.addf %257, %298 : vector<8x4xf32>
    %c56 = arith.constant 56 : index
    %c0_167 = arith.constant 0 : index
    %c0_168 = arith.constant 0 : index
    %301 = vector.load %arg1[%c56, %c0_167, %c0_168] : memref<64x8x4xbf16, #tpu.memory_space<vmem>>, vector<1x8x4xbf16>
    %302 = vector.shape_cast %301 : vector<1x8x4xbf16> to vector<8x4xbf16>
    %cst_169 = arith.constant 0.000000e+00 : bf16
    %303 = vector.broadcast %cst_169 : bf16 to vector<8x4xbf16>
    %304 = arith.maximumf %302, %303 : vector<8x4xbf16>
    %c57 = arith.constant 57 : index
    %c0_170 = arith.constant 0 : index
    %c0_171 = arith.constant 0 : index
    %305 = vector.load %arg1[%c57, %c0_170, %c0_171] : memref<64x8x4xbf16, #tpu.memory_space<vmem>>, vector<1x8x4xbf16>
    %306 = vector.shape_cast %305 : vector<1x8x4xbf16> to vector<8x4xbf16>
    %cst_172 = arith.constant 0.000000e+00 : bf16
    %307 = vector.broadcast %cst_172 : bf16 to vector<8x4xbf16>
    %308 = arith.maximumf %306, %307 : vector<8x4xbf16>
    %c58 = arith.constant 58 : index
    %c0_173 = arith.constant 0 : index
    %c0_174 = arith.constant 0 : index
    %309 = vector.load %arg1[%c58, %c0_173, %c0_174] : memref<64x8x4xbf16, #tpu.memory_space<vmem>>, vector<1x8x4xbf16>
    %310 = vector.shape_cast %309 : vector<1x8x4xbf16> to vector<8x4xbf16>
    %cst_175 = arith.constant 0.000000e+00 : bf16
    %311 = vector.broadcast %cst_175 : bf16 to vector<8x4xbf16>
    %312 = arith.maximumf %310, %311 : vector<8x4xbf16>
    %c59 = arith.constant 59 : index
    %c0_176 = arith.constant 0 : index
    %c0_177 = arith.constant 0 : index
    %313 = vector.load %arg1[%c59, %c0_176, %c0_177] : memref<64x8x4xbf16, #tpu.memory_space<vmem>>, vector<1x8x4xbf16>
    %314 = vector.shape_cast %313 : vector<1x8x4xbf16> to vector<8x4xbf16>
    %cst_178 = arith.constant 0.000000e+00 : bf16
    %315 = vector.broadcast %cst_178 : bf16 to vector<8x4xbf16>
    %316 = arith.maximumf %314, %315 : vector<8x4xbf16>
    %c60 = arith.constant 60 : index
    %c0_179 = arith.constant 0 : index
    %c0_180 = arith.constant 0 : index
    %317 = vector.load %arg1[%c60, %c0_179, %c0_180] : memref<64x8x4xbf16, #tpu.memory_space<vmem>>, vector<1x8x4xbf16>
    %318 = vector.shape_cast %317 : vector<1x8x4xbf16> to vector<8x4xbf16>
    %cst_181 = arith.constant 0.000000e+00 : bf16
    %319 = vector.broadcast %cst_181 : bf16 to vector<8x4xbf16>
    %320 = arith.maximumf %318, %319 : vector<8x4xbf16>
    %c61 = arith.constant 61 : index
    %c0_182 = arith.constant 0 : index
    %c0_183 = arith.constant 0 : index
    %321 = vector.load %arg1[%c61, %c0_182, %c0_183] : memref<64x8x4xbf16, #tpu.memory_space<vmem>>, vector<1x8x4xbf16>
    %322 = vector.shape_cast %321 : vector<1x8x4xbf16> to vector<8x4xbf16>
    %cst_184 = arith.constant 0.000000e+00 : bf16
    %323 = vector.broadcast %cst_184 : bf16 to vector<8x4xbf16>
    %324 = arith.maximumf %322, %323 : vector<8x4xbf16>
    %c62 = arith.constant 62 : index
    %c0_185 = arith.constant 0 : index
    %c0_186 = arith.constant 0 : index
    %325 = vector.load %arg1[%c62, %c0_185, %c0_186] : memref<64x8x4xbf16, #tpu.memory_space<vmem>>, vector<1x8x4xbf16>
    %326 = vector.shape_cast %325 : vector<1x8x4xbf16> to vector<8x4xbf16>
    %cst_187 = arith.constant 0.000000e+00 : bf16
    %327 = vector.broadcast %cst_187 : bf16 to vector<8x4xbf16>
    %328 = arith.maximumf %326, %327 : vector<8x4xbf16>
    %c63 = arith.constant 63 : index
    %c0_188 = arith.constant 0 : index
    %c0_189 = arith.constant 0 : index
    %329 = vector.load %arg1[%c63, %c0_188, %c0_189] : memref<64x8x4xbf16, #tpu.memory_space<vmem>>, vector<1x8x4xbf16>
    %330 = vector.shape_cast %329 : vector<1x8x4xbf16> to vector<8x4xbf16>
    %cst_190 = arith.constant 0.000000e+00 : bf16
    %331 = vector.broadcast %cst_190 : bf16 to vector<8x4xbf16>
    %332 = arith.maximumf %330, %331 : vector<8x4xbf16>
    %333 = arith.addf %316, %320 : vector<8x4xbf16>
    %334 = arith.addf %304, %308 : vector<8x4xbf16>
    %335 = arith.addf %334, %312 : vector<8x4xbf16>
    %336 = arith.addf %335, %333 : vector<8x4xbf16>
    %337 = arith.addf %324, %328 : vector<8x4xbf16>
    %338 = arith.addf %333, %337 : vector<8x4xbf16>
    %339 = arith.addf %338, %332 : vector<8x4xbf16>
    %340 = arith.extf %336 : vector<8x4xbf16> to vector<8x4xf32>
    %341 = arith.extf %339 : vector<8x4xbf16> to vector<8x4xf32>
    %342 = arith.addf %299, %340 : vector<8x4xf32>
    %343 = arith.addf %300, %341 : vector<8x4xf32>
    %344 = tpu.concatenate %211, %212, %342, %343 in 0 : vector<8x4xf32>, vector<8x4xf32>, vector<8x4xf32>, vector<8x4xf32> -> vector<32x4xf32>
    %345 = arith.truncf %344 : vector<32x4xf32> to vector<32x4xbf16>
    %c0_191 = arith.constant 0 : index
    %c0_192 = arith.constant 0 : index
    %346 = vector.load %arg2[%c0_191, %c0_192] : memref<4x128xbf16, #tpu.memory_space<vmem>>, vector<4x128xbf16>
    %cst_193 = arith.constant dense<0.000000e+00> : vector<32x128xf32>
    %347 = tpu.matmul %345, %346, %cst_193 {dimension_numbers = #tpu.dot_dimension_numbers<[1], [0], [0], [1], [0, 0, 1, 1], [], []>} : vector<32x4xbf16>, vector<4x128xbf16>, vector<32x128xf32> -> vector<32x128xf32>
    %c0_194 = arith.constant 0 : index
    %c0_195 = arith.constant 0 : index
    %348 = vector.load %arg3[%c0_194, %c0_195] : memref<1x128xf32, #tpu.memory_space<vmem>>, vector<1x128xf32>
    %349 = vector.broadcast %348 : vector<1x128xf32> to vector<32x128xf32>
    %350 = arith.addf %347, %349 : vector<32x128xf32>
    %cst_196 = arith.constant 0.000000e+00 : f32
    %351 = vector.broadcast %cst_196 : f32 to vector<32x128xf32>
    %352 = arith.maximumf %350, %351 : vector<32x128xf32>
    %353 = arith.truncf %352 : vector<32x128xf32> to vector<32x128xbf16>
    %354 = vector.extract_strided_slice %353 {offsets = [0, 0], sizes = [8, 128], strides = [1, 1]} : vector<32x128xbf16> to vector<8x128xbf16>
    %355 = vector.extract_strided_slice %353 {offsets = [8, 0], sizes = [8, 128], strides = [1, 1]} : vector<32x128xbf16> to vector<8x128xbf16>
    %356 = vector.extract_strided_slice %353 {offsets = [16, 0], sizes = [8, 128], strides = [1, 1]} : vector<32x128xbf16> to vector<8x128xbf16>
    %357 = vector.extract_strided_slice %353 {offsets = [24, 0], sizes = [8, 128], strides = [1, 1]} : vector<32x128xbf16> to vector<8x128xbf16>
    %358 = tpu.concatenate %354, %355, %356, %357 in 1 : vector<8x128xbf16>, vector<8x128xbf16>, vector<8x128xbf16>, vector<8x128xbf16> -> vector<8x512xbf16>
    %c0_197 = arith.constant 0 : index
    %c0_198 = arith.constant 0 : index
    %359 = vector.load %arg4[%c0_197, %c0_198] : memref<512x768xbf16, #tpu.memory_space<vmem>>, vector<512x768xbf16>
    %cst_199 = arith.constant dense<0.000000e+00> : vector<8x768xf32>
    %360 = tpu.matmul %358, %359, %cst_199 {dimension_numbers = #tpu.dot_dimension_numbers<[1], [0], [0], [1], [0, 0, 1, 1], [], []>} : vector<8x512xbf16>, vector<512x768xbf16>, vector<8x768xf32> -> vector<8x768xf32>
    %c0_200 = arith.constant 0 : index
    %c0_201 = arith.constant 0 : index
    %361 = vector.load %arg5[%c0_200, %c0_201] : memref<1x768xf32, #tpu.memory_space<vmem>>, vector<1x768xf32>
    %362 = vector.broadcast %361 : vector<1x768xf32> to vector<8x768xf32>
    %363 = arith.addf %360, %362 : vector<8x768xf32>
    %cst_202 = arith.constant 0.000000e+00 : f32
    %364 = vector.broadcast %cst_202 : f32 to vector<8x768xf32>
    %365 = arith.maximumf %363, %364 : vector<8x768xf32>
    %366 = arith.truncf %365 : vector<8x768xf32> to vector<8x768xbf16>
    %c0_203 = arith.constant 0 : index
    %c0_204 = arith.constant 0 : index
    %367 = vector.load %arg6[%c0_203, %c0_204] : memref<768x128xbf16, #tpu.memory_space<vmem>>, vector<768x128xbf16>
    %cst_205 = arith.constant dense<0.000000e+00> : vector<8x128xf32>
    %368 = tpu.matmul %366, %367, %cst_205 {dimension_numbers = #tpu.dot_dimension_numbers<[1], [0], [0], [1], [0, 0, 1, 1], [], []>} : vector<8x768xbf16>, vector<768x128xbf16>, vector<8x128xf32> -> vector<8x128xf32>
    %c0_206 = arith.constant 0 : index
    %c0_207 = arith.constant 0 : index
    %369 = vector.load %arg7[%c0_206, %c0_207] : memref<1x128xf32, #tpu.memory_space<vmem>>, vector<1x128xf32>
    %370 = vector.broadcast %369 : vector<1x128xf32> to vector<8x128xf32>
    %371 = arith.addf %368, %370 : vector<8x128xf32>
    %c0_208 = arith.constant 0 : index
    %c0_209 = arith.constant 0 : index
    %372 = vector.load %arg8[%c0_208, %c0_209] : memref<8x128xf32, #tpu.memory_space<vmem>>, vector<8x128xf32>
    tpu.vector_store %arg8[%c0_208, %c0_209], %371 {strides = array<i32>} : memref<8x128xf32, #tpu.memory_space<vmem>>, vector<8x128xf32>,
    return
  }
  func.func @transform_0(%arg0: i32) -> (i32, i32, i32) {
    %c0_i32 = arith.constant 0 : i32
    %c0_i32_0 = arith.constant 0 : i32
    %c0_i32_1 = arith.constant 0 : i32
    return %c0_i32, %arg0, %c0_i32_0 : i32, i32, i32
  }
  func.func @transform_1(%arg0: i32) -> (i32, i32) {
    %c0_i32 = arith.constant 0 : i32
    %c0_i32_0 = arith.constant 0 : i32
    %c0_i32_1 = arith.constant 0 : i32
    return %c0_i32, %c0_i32_0 : i32, i32
  }
  func.func @transform_2(%arg0: i32) -> (i32, i32) {
    %c0_i32 = arith.constant 0 : i32
    %c0_i32_0 = arith.constant 0 : i32
    %c0_i32_1 = arith.constant 0 : i32
    return %c0_i32, %c0_i32_0 : i32, i32
  }
  func.func @transform_3(%arg0: i32) -> (i32, i32) {
    %c0_i32 = arith.constant 0 : i32
    %c0_i32_0 = arith.constant 0 : i32
    %c0_i32_1 = arith.constant 0 : i32
    return %c0_i32, %c0_i32_0 : i32, i32
  }
  func.func @transform_4(%arg0: i32) -> (i32, i32) {
    %c0_i32 = arith.constant 0 : i32
    %c0_i32_0 = arith.constant 0 : i32
    %c0_i32_1 = arith.constant 0 : i32
    return %c0_i32, %c0_i32_0 : i32, i32
  }
  func.func @transform_5(%arg0: i32) -> (i32, i32) {
    %c0_i32 = arith.constant 0 : i32
    %c0_i32_0 = arith.constant 0 : i32
    %c0_i32_1 = arith.constant 0 : i32
    return %c0_i32, %c0_i32_0 : i32, i32
  }
  func.func @transform_6(%arg0: i32) -> (i32, i32) {
    %c0_i32 = arith.constant 0 : i32
    %c0_i32_0 = arith.constant 0 : i32
    %c0_i32_1 = arith.constant 0 : i32
    return %c0_i32, %c0_i32_0 : i32, i32
  }
  func.func @transform_7(%arg0: i32) -> (i32, i32) {
    %c0_i32 = arith.constant 0 : i32
    %c0_i32_0 = arith.constant 0 : i32
    return %arg0, %c0_i32 : i32, i32
  }
}

</mosaic_0001>

<bundles_post_ra>
// kernel: tpu_custom_call.1
= control target key start
LH: loop header
LB: loop body
LE: loop exit
PB: predicated region body
PF: predicated region fallthrough
CT: control target
= control target key end

     0   :  { %12 = vsyncpa [#allocation3], 0  ;;  %s3596_s0 = inlined_call_operand.vmem [shape: bf16[64,8,4], index: 0, kind: input, shape index: {}]   ;;  %s3597_s1 = inlined_call_operand.vmem [shape: bf16[4,128], index: 1, kind: input, shape index: {}]   ;;  %s3598_s2 = inlined_call_operand.vmem [shape: f32[1,128], index: 2, kind: input, shape index: {}]   ;;  %s3599_s3 = inlined_call_operand.hbm [shape: bf16[512,768], index: 3, kind: input, shape index: {}]   ;;  %s3600_s4 = inlined_call_operand.vmem [shape: f32[1,768], index: 4, kind: input, shape index: {}]   ;;  %s3601_s5 = inlined_call_operand.hbm [shape: bf16[768,128], index: 5, kind: input, shape index: {}]   ;;  %s3602_s6 = inlined_call_operand.vmem [shape: f32[1,128], index: 6, kind: input, shape index: {}]   ;;  %s3603_s7 = inlined_call_operand.hbm [shape: f32[8,128], index: 7, kind: output, shape index: {}]  }
   0x1   :  { %13 = vsyncpa [#allocation6], 0 }
   0x2   :  { %14 = vsyncpa [#allocation4], 0  ;;  %s3204_s24 = smov [#allocation2]   ;;  %s3132_s28 = scalar_lea.hbm %s3599_s3, 24576 }
   0x3   :  { %s26_s25 = sshll.u32 %s3204_s24, 4  ;;  %p3133_p0 = scmp.ne.s32.totalorder %s3599_s3, %s3132_s28  ;;  %s27_s25 = int_to_ptr.vmem [resolvable:$true] %s26_s25 }
   0x4   :  { %p3136_p1 = scmp.lt.u32.totalorder %s3132_s28, %s3599_s3 }
   0x6   :  { %p3138_p2 = pnand %p3136_p1, %p3133_p0 }
   0x8   :  { %3141 = shalt.err (!%p3138_p2)
}
   0x9   :  { %s3142_s10 = scalar_lea.vmem %s27_s25, 24576  ;;  %p3147_p4 = scmp.lt.s32.totalorder %s27_s25, %s27_s25 }
   0xa   :  { %p3143_p3 = scmp.ne.s32.totalorder %s27_s25, %s3142_s10  ;;  %p3148_p5 = scmp.lt.s32.totalorder %s3142_s10, %s3142_s10 }
   0xc   :  { %p3149_p6 = por %p3148_p5, %p3147_p4 }
   0xe   :  { %p3150_p7 = pnand %p3149_p6, %p3143_p3 }
  0x10   :  { %3153 = shalt.err (!%p3150_p7)
}
  0x11   :  { %s3205_s11 = smov 384   ;;  %s3206_s12 = smov 24  }
  0x12   :  { %32 = dma.hbm_to_vmem [thread:$0]  %s3599_s3, 24576, %s27_s25, [#allocation3], %s3205_s11, %s3205_s11, %s3206_s12  }
  0x13   :  { %s3207_s15 = smov [#allocation5]   ;;  %s3154_s19 = scalar_lea.hbm %s3601_s5, 6144 }
  0x14   :  { %s40_s16 = sshll.u32 %s3207_s15, 4  ;;  %p3155_p8 = scmp.ne.s32.totalorder %s3601_s5, %s3154_s19  ;;  %s41_s16 = int_to_ptr.vmem [resolvable:$true] %s40_s16 }
  0x15   :  { %p3158_p9 = scmp.lt.u32.totalorder %s3154_s19, %s3601_s5 }
  0x17   :  { %p3160_p10 = pnand %p3158_p9, %p3155_p8 }
  0x19   :  { %3163 = shalt.err (!%p3160_p10)
}
  0x1a   :  { %s3164_s24 = scalar_lea.vmem %s41_s16, 6144  ;;  %p3169_p12 = scmp.lt.s32.totalorder %s41_s16, %s41_s16 }
  0x1b   :  { %p3165_p11 = scmp.ne.s32.totalorder %s41_s16, %s3164_s24  ;;  %p3170_p13 = scmp.lt.s32.totalorder %s3164_s24, %s3164_s24 }
  0x1d   :  { %p3171_p0 = por %p3170_p13, %p3169_p12 }
  0x1f   :  { %p3172_p1 = pnand %p3171_p0, %p3165_p11 }
  0x21   :  { %3175 = shalt.err (!%p3172_p1)
}
  0x22   :  { %s3208_s3 = smov 64   ;;  %s3209_s25 = smov 4  }
  0x23   :  { %46 = dma.hbm_to_vmem [thread:$0]  %s3601_s5, 6144, %s41_s16, [#allocation6], %s3208_s3, %s3208_s3, %s3209_s25  }
  0x24   :  { %3198 = dma.done.wait [#allocation3], 24576  }
  0x25   :  { %3199 = vsyncadd [#allocation3], 4294942720 }
  0x26   :  { %3200 = dma.done.wait [#allocation6], 6144  }
  0x27   :  { %3201 = vsyncadd [#allocation6], 4294961152  ;;  %vm352_vm0 = vcmask 1041408   ;;  %v337_v0 = vld [vmem:[%s3597_s1] sm:$0x3]  ;;  %v3210_v4 = vmov 0  }
  0x28   :  { %v56_v1 = vld [vmem:[%s3596_s0] sm:$0xf]  ;;  %v2387_v2 = vld [vmem:[%s3596_s0 + $0x4] sm:$0xf]  ;;  %2787 = vmatprep.subr.msk.bf16.mxu0 %vm352_vm0, %v337_v0  ;;  %v354_v3 = vsel %vm352_vm0, %v337_v0, 0  ;;  %vm345_vm1 = vcmask 31744  }
  0x29   :  { %v57_v5 = vmax.bf16 %v3210_v4, %v56_v1  ;;  %v60_v6 = vmax.bf16 %v3210_v4, %v2387_v2  ;;  %v2388_v7 = vld [vmem:[%s3596_s0 + $0x8] sm:$0xf]  ;;  %v2389_v8 = vld [vmem:[%s3596_s0 + $0xc] sm:$0xf]  ;;  %2764 = vmatpush3.bf16.msra.mxu0 %v354_v3  ;;  %v2390_v11 = vld [vmem:[%s3596_s0 + $0x10] sm:$0xf] }
  0x2a   :  { %v63_v9 = vmax.bf16 %v3210_v4, %v2388_v7  ;;  %v66_v10 = vmax.bf16 %v3210_v4, %v2389_v8  ;;  %v2391_v12 = vld [vmem:[%s3596_s0 + $0x14] sm:$0xf]  ;;  %v2392_v13 = vld [vmem:[%s3596_s0 + $0x18] sm:$0xf]  ;;  %v69_v14 = vmax.bf16 %v3210_v4, %v2390_v11  ;;  %v2393_v17 = vld [vmem:[%s3596_s0 + $0x1c] sm:$0xf] }
  0x2b   :  { %v72_v15 = vmax.bf16 %v3210_v4, %v2391_v12  ;;  %v75_v16 = vmax.bf16 %v3210_v4, %v2392_v13  ;;  %v80_v18 = vadd.bf16 %v60_v6, %v57_v5  ;;  %v2394_v19 = vld [vmem:[%s3596_s0 + $0x20] sm:$0xf]  ;;  %v2395_v20 = vld [vmem:[%s3596_s0 + $0x24] sm:$0xf]  ;;  %v78_v21 = vmax.bf16 %v3210_v4, %v2393_v17  ;;  %v2396_v24 = vld [vmem:[%s3596_s0 + $0x28] sm:$0xf] }
  0x2c   :  { %v90_v22 = vmax.bf16 %v3210_v4, %v2394_v19  ;;  %v93_v23 = vmax.bf16 %v3210_v4, %v2395_v20  ;;  %v2397_v25 = vld [vmem:[%s3596_s0 + $0x2c] sm:$0xf]  ;;  %v2398_v26 = vld [vmem:[%s3596_s0 + $0x30] sm:$0xf]  ;;  %v79_v27 = vadd.bf16 %v69_v14, %v66_v10  ;;  %v96_v30 = vmax.bf16 %v3210_v4, %v2396_v24  ;;  %v2399_v31 = vld [vmem:[%s3596_s0 + $0x34] sm:$0xf] }
  0x2d   :  { %v81_v28 = vadd.bf16 %v80_v18, %v63_v9  ;;  %v83_v29 = vadd.bf16 %v75_v16, %v72_v15  ;;  %v2400_v32 = vld [vmem:[%s3596_s0 + $0x38] sm:$0xf]  ;;  %v2401_v33 = vld [vmem:[%s3596_s0 + $0x3c] sm:$0xf]  ;;  %v99_v34 = vmax.bf16 %v3210_v4, %v2397_v25  ;;  %v102_v35 = vmax.bf16 %v3210_v4, %v2398_v26  ;;  %v2402_v38 = vld [vmem:[%s3596_s0 + $0x40] sm:$0xf] }
  0x2e   :  { %v105_v36 = vmax.bf16 %v3210_v4, %v2399_v31  ;;  %v108_v37 = vmax.bf16 %v3210_v4, %v2400_v32  ;;  %v2403_v39 = vld [vmem:[%s3596_s0 + $0x44] sm:$0xf]  ;;  %v2404_v40 = vld [vmem:[%s3596_s0 + $0x48] sm:$0xf]  ;;  %v111_v43 = vmax.bf16 %v3210_v4, %v2401_v33  ;;  %v113_v44 = vadd.bf16 %v93_v23, %v90_v22  ;;  %v2405_v45 = vld [vmem:[%s3596_s0 + $0x4c] sm:$0xf] }
  0x2f   :  { %v82_v41 = vadd.bf16 %v81_v28, %v79_v27  ;;  %v84_v42 = vadd.bf16 %v83_v29, %v79_v27  ;;  %v2406_v46 = vld [vmem:[%s3596_s0 + $0x50] sm:$0xf]  ;;  %v2407_v47 = vld [vmem:[%s3596_s0 + $0x54] sm:$0xf]  ;;  %v112_v48 = vadd.bf16 %v102_v35, %v99_v34  ;;  %v125_v50 = vmax.bf16 %v3210_v4, %v2402_v38  ;;  %v2408_v52 = vld [vmem:[%s3596_s0 + $0x58] sm:$0xf] }
  0x30   :  { %v116_v49 = vadd.bf16 %v108_v37, %v105_v36  ;;  %v128_v51 = vmax.bf16 %v3210_v4, %v2403_v39  ;;  %v2409_v53 = vld [vmem:[%s3596_s0 + $0x5c] sm:$0xf]  ;;  %v114_v56 = vadd.bf16 %v113_v44, %v96_v30  ;;  %v131_v57 = vmax.bf16 %v3210_v4, %v2404_v40  ;;  %v2410_v58 = vld [vmem:[%s3596_s0 + $0x60] sm:$0xf]  ;;  %v2411_v63 = vld [vmem:[%s3596_s0 + $0x64] sm:$0xf] }
  0x31   :  { %v85_v54 = vadd.bf16 %v84_v42, %v78_v21  ;;  %v86_v55 = vunpack.c.l.bf16 %v82_v41  ;;  %v134_v60 = vmax.bf16 %v3210_v4, %v2405_v45  ;;  %v137_v61 = vmax.bf16 %v3210_v4, %v2406_v46  ;;  %v2412_v0 = vld [vmem:[%s3596_s0 + $0x68] sm:$0xf]  ;;  %v2413_v6 = vld [vmem:[%s3596_s0 + $0x6c] sm:$0xf]  ;;  %v2414_v7 = vld [vmem:[%s3596_s0 + $0x70] sm:$0xf] }
  0x32   :  { %v117_v59 = vadd.bf16 %v116_v49, %v112_v48  ;;  %v140_v62 = vmax.bf16 %v3210_v4, %v2407_v47  ;;  %v115_v2 = vadd.bf16 %v114_v56, %v112_v48  ;;  %v143_v3 = vmax.bf16 %v3210_v4, %v2408_v52  ;;  %v2415_v12 = vld [vmem:[%s3596_s0 + $0x74] sm:$0xf]  ;;  %v2416_v13 = vld [vmem:[%s3596_s0 + $0x78] sm:$0xf]  ;;  %v2417_v18 = vld [vmem:[%s3596_s0 + $0x7c] sm:$0xf] }
  0x33   :  { %v87_v1 = vunpack.c.l.bf16 %v85_v54  ;;  %v146_v5 = vmax.bf16 %v3210_v4, %v2409_v53  ;;  %v147_v9 = vadd.bf16 %v137_v61, %v134_v60  ;;  %v148_v10 = vadd.bf16 %v128_v51, %v125_v50  ;;  %v2418_v23 = vld [vmem:[%s3596_s0 + $0x80] sm:$0xf]  ;;  %v2419_v28 = vld [vmem:[%s3596_s0 + $0x84] sm:$0xf]  ;;  %v2420_v29 = vld [vmem:[%s3596_s0 + $0x88] sm:$0xf] }
  0x34   :  { %v118_v8 = vadd.bf16 %v117_v59, %v111_v43  ;;  %v160_v11 = vmax.bf16 %v3210_v4, %v2410_v58  ;;  %v119_v14 = vunpack.c.l.bf16 %v115_v2  ;;  %v151_v15 = vadd.bf16 %v143_v3, %v140_v62  ;;  %v2421_v30 = vld [vmem:[%s3596_s0 + $0x8c] sm:$0xf]  ;;  %v2422_v35 = vld [vmem:[%s3596_s0 + $0x90] sm:$0xf]  ;;  %v2423_v40 = vld [vmem:[%s3596_s0 + $0x94] sm:$0xf] }
  0x35   :  { %v163_v16 = vmax.bf16 %v3210_v4, %v2411_v63  ;;  %v166_v17 = vmax.bf16 %v3210_v4, %v2412_v0  ;;  %v149_v20 = vadd.bf16 %v148_v10, %v131_v57  ;;  %v169_v21 = vmax.bf16 %v3210_v4, %v2413_v6  ;;  %v2424_v41 = vld [vmem:[%s3596_s0 + $0x98] sm:$0xf]  ;;  %v2425_v42 = vld [vmem:[%s3596_s0 + $0x9c] sm:$0xf]  ;;  %v2426_v51 = vld [vmem:[%s3596_s0 + $0xa0] sm:$0xf] }
  0x36   :  { %v120_v19 = vunpack.c.l.bf16 %v118_v8  ;;  %v172_v22 = vmax.bf16 %v3210_v4, %v2414_v7  ;;  %v121_v24 = vadd.f32 %v119_v14, %v86_v55  ;;  %v152_v25 = vadd.bf16 %v151_v15, %v147_v9  ;;  %v2427_v52 = vld [vmem:[%s3596_s0 + $0xa4] sm:$0xf]  ;;  %v2428_v57 = vld [vmem:[%s3596_s0 + $0xa8] sm:$0xf]  ;;  %v2429_v58 = vld [vmem:[%s3596_s0 + $0xac] sm:$0xf] }
  0x37   :  { %v175_v26 = vmax.bf16 %v3210_v4, %v2415_v12  ;;  %v178_v27 = vmax.bf16 %v3210_v4, %v2416_v13  ;;  %v150_v32 = vadd.bf16 %v149_v20, %v147_v9  ;;  %v181_v33 = vmax.bf16 %v3210_v4, %v2417_v18  ;;  %v2430_v63 = vld [vmem:[%s3596_s0 + $0xb0] sm:$0xf]  ;;  %v2431_v0 = vld [vmem:[%s3596_s0 + $0xb4] sm:$0xf]  ;;  %v2433_v7 = vld [vmem:[%s3596_s0 + $0xbc] sm:$0xf] }
  0x38   :  { %v122_v31 = vadd.f32 %v120_v19, %v87_v1  ;;  %v182_v34 = vadd.bf16 %v172_v22, %v169_v21  ;;  %v153_v36 = vadd.bf16 %v152_v25, %v146_v5  ;;  %v183_v37 = vadd.bf16 %v163_v16, %v160_v11  ;;  %v2432_v1 = vld [vmem:[%s3596_s0 + $0xb8] sm:$0xf]  ;;  %v2434_v8 = vld [vmem:[%s3596_s0 + $0xc0] sm:$0xf]  ;;  %v2435_v9 = vld [vmem:[%s3596_s0 + $0xc4] sm:$0xf] }
  0x39   :  { %v186_v38 = vadd.bf16 %v178_v27, %v175_v26  ;;  %v195_v39 = vmax.bf16 %v3210_v4, %v2418_v23  ;;  %v154_v43 = vunpack.c.l.bf16 %v150_v32  ;;  %v198_v44 = vmax.bf16 %v3210_v4, %v2419_v28  ;;  %v2796_v10 = vld [vmem:[#allocation2 + $0x4] ss:$24 sps:$4 sm:$0xff]   ;;  %v2437_v15 = vld [vmem:[%s3596_s0 + $0xcc] sm:$0xf]  ;;  %v2438_v21 = vld [vmem:[%s3596_s0 + $0xd0] sm:$0xf] }
  0x3a   :  { %v201_v45 = vmax.bf16 %v3210_v4, %v2420_v29  ;;  %v204_v46 = vmax.bf16 %v3210_v4, %v2421_v30  ;;  %v155_v47 = vunpack.c.l.bf16 %v153_v36  ;;  %v184_v48 = vadd.bf16 %v183_v37, %v166_v17  ;;  %v2800_v16 = vld [vmem:[#allocation2 + $0xc] ss:$24 sps:$4 sm:$0xff]   ;;  %1601 = vmatprep.subr.bf16.mxu1 %v2796_v10  ;;  %v2801_v22 = vld [vmem:[#allocation2] ss:$24 sps:$4 sm:$0xff]   ;;  %v2436_v26 = vld [vmem:[%s3596_s0 + $0xc8] sm:$0xf] }
  0x3b   :  { %v187_v49 = vadd.bf16 %v186_v38, %v182_v34  ;;  %v207_v50 = vmax.bf16 %v3210_v4, %v2422_v35  ;;  %v156_v53 = vadd.f32 %v154_v43, %v121_v24  ;;  %v210_v54 = vmax.bf16 %v3210_v4, %v2423_v40  ;;  %1683 = vmatprep.subr.bf16.mxu0 %v2800_v16  ;;  %v2802_v27 = vld [vmem:[#allocation2 + $0x34] ss:$24 sps:$4 sm:$0xff]   ;;  %v2808_v40 = vld [vmem:[#allocation2 + $0x64] ss:$24 sps:$4 sm:$0xff]   ;;  %s3211_s8 = smov [#allocation7]  }
  0x3c   :  { %v213_v55 = vmax.bf16 %v3210_v4, %v2424_v41  ;;  %v216_v56 = vmax.bf16 %v3210_v4, %v2425_v42  ;;  %v157_v59 = vadd.f32 %v155_v47, %v122_v31  ;;  %v185_v60 = vadd.bf16 %v184_v48, %v182_v34  ;;  %v2439_v32 = vld [vmem:[%s3596_s0 + $0xd4] sm:$0xf]  ;;  %1602 = vmatpush1.bf16.msra.mxu1 %v2801_v22  ;;  %v2807_v34 = vld [vmem:[#allocation2 + $0x30] ss:$24 sps:$4 sm:$0xff]   ;;  %s2377_s9 = sshll.u32 %s3211_s8, 4  ;;  %s2378_s9 = int_to_ptr.vmem [resolvable:$true] %s2377_s9 }
  0x3d   :  { %v188_v61 = vadd.bf16 %v187_v49, %v181_v33  ;;  %v217_v62 = vadd.bf16 %v207_v50, %v204_v46  ;;  %v218_v2 = vadd.bf16 %v198_v44, %v195_v39  ;;  %v232_v5 = vmax.bf16 %v3210_v4, %v2426_v51  ;;  %v2440_v33 = vld [vmem:[%s3596_s0 + $0xd8] sm:$0xf]  ;;  %v2441_v39 = vld [vmem:[%s3596_s0 + $0xdc] sm:$0xf]  ;;  %1603 = vmatprep.subr.bf16.mxu1 %v2802_v27  ;;  %v2443_v46 = vld [vmem:[%s3596_s0 + $0xe4] sm:$0xf]  ;;  %p3181_p3 = scmp.lt.s32.totalorder %s2378_s9, %s2378_s9 }
  0x3e   :  { %v221_v3 = vadd.bf16 %v213_v55, %v210_v54  ;;  %v235_v6 = vmax.bf16 %v3210_v4, %v2427_v52  ;;  %v189_v11 = vunpack.c.l.bf16 %v185_v60  ;;  %v238_v13 = vmax.bf16 %v3210_v4, %v2428_v57  ;;  %v2445_v51 = vld [vmem:[%s3596_s0 + $0xec] sm:$0xf]  ;;  %v2446_v52 = vld [vmem:[%s3596_s0 + $0xf0] sm:$0xf]  ;;  %v2444_v57 = vld [vmem:[%s3596_s0 + $0xe8] sm:$0xf] }
  0x3f   :  { %v190_v12 = vunpack.c.l.bf16 %v188_v61  ;;  %v241_v14 = vmax.bf16 %v3210_v4, %v2429_v58  ;;  %v219_v17 = vadd.bf16 %v218_v2, %v201_v45  ;;  %v244_v19 = vmax.bf16 %v3210_v4, %v2430_v63  ;;  %v2442_v45 = vld [vmem:[%s3596_s0 + $0xe0] sm:$0xf]  ;;  %v2447_v58 = vld [vmem:[%s3596_s0 + $0xf4] sm:$0xf]  ;;  %v2448_v63 = vld [vmem:[%s3596_s0 + $0xf8] sm:$0xf] }
  0x40   :  { %v222_v18 = vadd.bf16 %v221_v3, %v217_v62  ;;  %v247_v20 = vmax.bf16 %v3210_v4, %v2431_v0  ;;  %v191_v23 = vadd.f32 %v189_v11, %v156_v53  ;;  %v250_v25 = vmax.bf16 %v3210_v4, %v2432_v1  ;;  %1604 = vmatpush1.bf16.msra.mxu1 %v2807_v34  ;;  %v2813_v0 = vld [vmem:[#allocation2 + $0x60] ss:$24 sps:$4 sm:$0xff]   ;;  %v2826_v34 = vld [vmem:[#allocation2 + $0xf4] ss:$24 sps:$4 sm:$0xff]   ;;  %s3176_s10 = scalar_lea.vmem %s2378_s9, 128 }
  0x41   :  { %v192_v24 = vadd.f32 %v190_v12, %v157_v59  ;;  %v220_v28 = vadd.bf16 %v219_v17, %v217_v62  ;;  %v254_v30 = vadd.bf16 %v244_v19, %v241_v14  ;;  %v255_v31 = vadd.bf16 %v235_v6, %v232_v5  ;;  %1605 = vmatprep.subr.bf16.mxu1 %v2808_v40  ;;  %v2814_v6 = vld [vmem:[#allocation2 + $0x94] ss:$24 sps:$4 sm:$0xff]   ;;  %v2819_v19 = vld [vmem:[#allocation2 + $0x90] ss:$24 sps:$4 sm:$0xff]   ;;  %p3177_p2 = scmp.ne.s32.totalorder %s2378_s9, %s3176_s10  ;;  %p3182_p4 = scmp.lt.s32.totalorder %s3176_s10, %s3176_s10 }
  0x42   :  { %v223_v29 = vadd.bf16 %v222_v18, %v216_v56  ;;  %v253_v35 = vmax.bf16 %v3210_v4, %v2433_v7  ;;  %v258_v36 = vadd.bf16 %v250_v25, %v247_v20  ;;  %v267_v37 = vmax.bf16 %v3210_v4, %v2434_v8 }
  0x43   :  { %v270_v38 = vmax.bf16 %v3210_v4, %v2435_v9  ;;  %v224_v41 = vunpack.c.l.bf16 %v220_v28  ;;  %v256_v43 = vadd.bf16 %v255_v31, %v238_v13  ;;  %v276_v44 = vmax.bf16 %v3210_v4, %v2437_v15  ;;  %v2449_v15 = vld [vmem:[%s3596_s0 + $0xfc] sm:$0xf]  ;;  %p3183_p5 = por %p3182_p4, %p3181_p3 }
  0x44   :  { %v225_v42 = vunpack.c.l.bf16 %v223_v29  ;;  %v259_v47 = vadd.bf16 %v258_v36, %v254_v30  ;;  %v279_v48 = vmax.bf16 %v3210_v4, %v2438_v21  ;;  %v282_v49 = vmax.bf16 %v3210_v4, %v2439_v32  ;;  %1606 = vmatpush1.bf16.msra.mxu1 %v2813_v0  ;;  %v2862_v0 = vld [vmem:[#allocation2 + $0x214] ss:$24 sps:$4 sm:$0xff]  }
  0x45   :  { %v285_v50 = vmax.bf16 %v3210_v4, %v2440_v33  ;;  %v226_v53 = vadd.f32 %v224_v41, %v191_v23  ;;  %v228_v55 = vadd.f32 %v224_v41, %v189_v11  ;;  %v273_v56 = vmax.bf16 %v3210_v4, %v2436_v26  ;;  %1607 = vmatprep.subr.bf16.mxu1 %v2814_v6  ;;  %v2825_v33 = vld [vmem:[#allocation2 + $0xc0] ss:$24 sps:$4 sm:$0xff]   ;;  %v2831_v41 = vld [vmem:[#allocation2 + $0xf0] ss:$24 sps:$4 sm:$0xff]   ;;  %p3184_p6 = pnand %p3183_p5, %p3177_p2 }
  0x46   :  { %v227_v54 = vadd.f32 %v225_v42, %v192_v24  ;;  %v229_v59 = vadd.f32 %v225_v42, %v190_v12  ;;  %v257_v60 = vadd.bf16 %v256_v43, %v254_v30  ;;  %v260_v61 = vadd.bf16 %v259_v47, %v253_v35  ;;  %v2820_v24 = vld [vmem:[#allocation2 + $0xc4] ss:$24 sps:$4 sm:$0xff]   ;;  %v2837_v47 = vld [vmem:[#allocation2 + $0x120] ss:$24 sps:$4 sm:$0xff]  }
  0x47   :  { %v289_v62 = vadd.bf16 %v279_v48, %v276_v44  ;;  %v288_v2 = vmax.bf16 %v3210_v4, %v2441_v39  ;;  %v290_v3 = vadd.bf16 %v270_v38, %v267_v37  ;;  %v293_v5 = vadd.bf16 %v285_v50, %v282_v49  ;;  %v2798_v44 = vld [vmem:[#allocation2 + $0x8] ss:$24 sps:$4 sm:$0xff]   ;;  %v2838_v48 = vld [vmem:[#allocation2 + $0x154] ss:$24 sps:$4 sm:$0xff]   ;;  %v2804_v49 = vld [vmem:[#allocation2 + $0x38] ss:$24 sps:$4 sm:$0xff]  }
  0x48   :  { %v335_v1 = vpack.c.bf16 %v227_v54, %v226_v53  ;;  %v261_v7 = vunpack.c.l.bf16 %v257_v60  ;;  %v262_v8 = vunpack.c.l.bf16 %v260_v61  ;;  %v302_v9 = vmax.bf16 %v3210_v4, %v2442_v45  ;;  %1608 = vmatpush1.bf16.msra.mxu1 %v2819_v19  ;;  %v2812_v50 = vld [vmem:[#allocation2 + $0x6c] ss:$24 sps:$4 sm:$0xff]   ;;  %v2810_v53 = vld [vmem:[#allocation2 + $0x68] ss:$24 sps:$4 sm:$0xff]   ;;  %v2818_v54 = vld [vmem:[#allocation2 + $0x9c] ss:$24 sps:$4 sm:$0xff]  }
  0x49   :  { %v305_v10 = vmax.bf16 %v3210_v4, %v2443_v46  ;;  %v291_v11 = vadd.bf16 %v290_v3, %v273_v56  ;;  %v294_v12 = vadd.bf16 %v293_v5, %v289_v62  ;;  %v311_v13 = vmax.bf16 %v3210_v4, %v2445_v51  ;;  %1609 = vmatprep.subr.bf16.mxu1 %v2820_v24  ;;  %v2806_v46 = vld [vmem:[#allocation2 + $0x3c] ss:$24 sps:$4 sm:$0xff]   ;;  %v2843_v51 = vld [vmem:[#allocation2 + $0x150] ss:$24 sps:$4 sm:$0xff]  }
  0x4a   :  { %2765 = vmatprep.mubr.msk.bf16.mxu0 %vm345_vm1, %v335_v1  ;;  %v314_v14 = vmax.bf16 %v3210_v4, %v2446_v52  ;;  %v308_v16 = vmax.bf16 %v3210_v4, %v2444_v57  ;;  %v317_v17 = vmax.bf16 %v3210_v4, %v2447_v58  ;;  %v320_v18 = vmax.bf16 %v3210_v4, %v2448_v63  ;;  %v2844_v52 = vld [vmem:[#allocation2 + $0x184] ss:$24 sps:$4 sm:$0xff]   ;;  %v2816_v56 = vld [vmem:[#allocation2 + $0x98] ss:$24 sps:$4 sm:$0xff]   ;;  %v2850_v57 = vld [vmem:[#allocation2 + $0x1b4] ss:$24 sps:$4 sm:$0xff]  }
  0x4b   :  { %v263_v20 = vadd.f32 %v261_v7, %v228_v55  ;;  %v292_v21 = vadd.bf16 %v291_v11, %v289_v62  ;;  %v295_v22 = vadd.bf16 %v294_v12, %v288_v2  ;;  %v264_v25 = vadd.f32 %v262_v8, %v229_v59  ;;  %v2849_v55 = vld [vmem:[#allocation2 + $0x180] ss:$24 sps:$4 sm:$0xff]   ;;  %v2824_v58 = vld [vmem:[#allocation2 + $0xcc] ss:$24 sps:$4 sm:$0xff]   ;;  %v2855_v59 = vld [vmem:[#allocation2 + $0x1b0] ss:$24 sps:$4 sm:$0xff]  }
  0x4c   :  { %v324_v23 = vadd.bf16 %v314_v14, %v311_v13  ;;  %v323_v26 = vmax.bf16 %v3210_v4, %v2449_v15  ;;  %v325_v27 = vadd.bf16 %v305_v10, %v302_v9  ;;  %v328_v28 = vadd.bf16 %v320_v18, %v317_v17  ;;  %1610 = vmatpush1.bf16.msra.mxu1 %v2825_v33  ;;  %v2832_v4 = vld [vmem:[#allocation2 + $0x124] ss:$24 sps:$4 sm:$0xff]   ;;  %v2822_v61 = vld [vmem:[#allocation2 + $0xc8] ss:$24 sps:$4 sm:$0xff]   ;;  %v2828_v1 = vld [vmem:[#allocation2 + $0xf8] ss:$24 sps:$4 sm:$0xff]  }
  0x4d   :  { %v296_v29 = vunpack.c.l.bf16 %v292_v21  ;;  %v297_v30 = vunpack.c.l.bf16 %v295_v22  ;;  %1611 = vmatprep.subr.bf16.mxu1 %v2826_v34  ;;  %v2856_v60 = vld [vmem:[#allocation2 + $0x1e4] ss:$24 sps:$4 sm:$0xff]   ;;  %v2861_v63 = vld [vmem:[#allocation2 + $0x1e0] ss:$24 sps:$4 sm:$0xff]   ;;  %v2867_v3 = vld [vmem:[#allocation2 + $0x210] ss:$24 sps:$4 sm:$0xff]  }
  0x4e   :  { %v326_v31 = vadd.bf16 %v325_v27, %v308_v16  ;;  %v329_v32 = vadd.bf16 %v328_v28, %v324_v23  ;;  %v2830_v62 = vld [vmem:[#allocation2 + $0xfc] ss:$24 sps:$4 sm:$0xff]   ;;  %v2836_v2 = vld [vmem:[#allocation2 + $0x12c] ss:$24 sps:$4 sm:$0xff]   ;;  %v2834_v6 = vld [vmem:[#allocation2 + $0x128] ss:$24 sps:$4 sm:$0xff]  }
  0x4f   :  { %v298_v35 = vadd.f32 %v296_v29, %v263_v20  ;;  %v299_v36 = vadd.f32 %v297_v30, %v264_v25  ;;  %v2868_v5 = vld [vmem:[#allocation2 + $0x244] ss:$24 sps:$4 sm:$0xff]   ;;  %v2873_v8 = vld [vmem:[#allocation2 + $0x240] ss:$24 sps:$4 sm:$0xff]   ;;  %v2874_v20 = vld [vmem:[#allocation2 + $0x274] ss:$24 sps:$4 sm:$0xff]  }
  0x50   :  { %v327_v37 = vadd.bf16 %v326_v31, %v324_v23  ;;  %v330_v38 = vadd.bf16 %v329_v32, %v323_v26  ;;  %1612 = vmatpush1.bf16.msra.mxu1 %v2831_v41  ;;  %v2842_v7 = vld [vmem:[#allocation2 + $0x15c] ss:$24 sps:$4 sm:$0xff]   ;;  %v2840_v9 = vld [vmem:[#allocation2 + $0x158] ss:$24 sps:$4 sm:$0xff]   ;;  %v2848_v10 = vld [vmem:[#allocation2 + $0x18c] ss:$24 sps:$4 sm:$0xff]  }
  0x51   :  { %1613 = vmatprep.subr.bf16.mxu1 %v2832_v4  ;;  %v2846_v11 = vld [vmem:[#allocation2 + $0x188] ss:$24 sps:$4 sm:$0xff]   ;;  %v2854_v12 = vld [vmem:[#allocation2 + $0x1bc] ss:$24 sps:$4 sm:$0xff]   ;;  %v2852_v13 = vld [vmem:[#allocation2 + $0x1b8] ss:$24 sps:$4 sm:$0xff]  }
  0x52   :  { %v331_v39 = vunpack.c.l.bf16 %v327_v37  ;;  %v332_v40 = vunpack.c.l.bf16 %v330_v38  ;;  %v2860_v14 = vld [vmem:[#allocation2 + $0x1ec] ss:$24 sps:$4 sm:$0xff]   ;;  %v2858_v15 = vld [vmem:[#allocation2 + $0x1e8] ss:$24 sps:$4 sm:$0xff]   ;;  %v2866_v16 = vld [vmem:[#allocation2 + $0x21c] ss:$24 sps:$4 sm:$0xff]  }
  0x53   :  { %v2864_v17 = vld [vmem:[#allocation2 + $0x218] ss:$24 sps:$4 sm:$0xff]   ;;  %v2872_v18 = vld [vmem:[#allocation2 + $0x24c] ss:$24 sps:$4 sm:$0xff]   ;;  %v2870_v19 = vld [vmem:[#allocation2 + $0x248] ss:$24 sps:$4 sm:$0xff]  }
  0x54   :  { %v333_v42 = vadd.f32 %v331_v39, %v298_v35  ;;  %v334_v43 = vadd.f32 %v332_v40, %v299_v36  ;;  %1614 = vmatpush1.bf16.msra.mxu1 %v2837_v47  ;;  %v2878_v21 = vld [vmem:[#allocation2 + $0x27c] ss:$24 sps:$4 sm:$0xff]   ;;  %v2876_v22 = vld [vmem:[#allocation2 + $0x278] ss:$24 sps:$4 sm:$0xff]   ;;  %v2884_v25 = vld [vmem:[#allocation2 + $0x2ac] ss:$24 sps:$4 sm:$0xff]  }
  0x55   :  { %1615 = vmatprep.subr.bf16.mxu1 %v2838_v48  ;;  %v2879_v23 = vld [vmem:[#allocation2 + $0x270] ss:$24 sps:$4 sm:$0xff]   ;;  %v2880_v24 = vld [vmem:[#allocation2 + $0x2a4] ss:$24 sps:$4 sm:$0xff]   ;;  %v2885_v27 = vld [vmem:[#allocation2 + $0x2a0] ss:$24 sps:$4 sm:$0xff]  }
  0x56   :  { %v336_v45 = vpack.c.bf16 %v334_v43, %v333_v42  ;;  %v2882_v26 = vld [vmem:[#allocation2 + $0x2a8] ss:$24 sps:$4 sm:$0xff]   ;;  %v2886_v28 = vld [vmem:[#allocation2 + $0x2d4] ss:$24 sps:$4 sm:$0xff]   ;;  %v2888_v30 = vld [vmem:[#allocation2 + $0x2d8] ss:$24 sps:$4 sm:$0xff]  }
  0x57   :  { %v2890_v29 = vld [vmem:[#allocation2 + $0x2dc] ss:$24 sps:$4 sm:$0xff]   ;;  %v2891_v31 = vld [vmem:[#allocation2 + $0x2d0] ss:$24 sps:$4 sm:$0xff]   ;;  %v2897_v33 = vld [vmem:[#allocation2 + $0x30c] ss:$24 sps:$4 sm:$0xff]  }
  0x58   :  { %2766 = vmatmul.mubr.msk.bf16.vlgmr.msra.gmra.mrb[0].mxu0 %vm345_vm1, %v336_v45  ;;  %1616 = vmatpush1.bf16.msra.mxu1 %v2843_v51  ;;  %v2894_v32 = vld [vmem:[#allocation2 + $0x304] ss:$24 sps:$4 sm:$0xff]   ;;  %v2450_v34 = vld [vmem:[%s3598_s2] ss:$0 sm:$0xff]  ;;  %v2900_v51 = vld [vmem:[#allocation2 + $0x334] ss:$24 sps:$4 sm:$0xff]  }
  0x59   :  { %1684 = vmatpush1.bf16.msra.mxu0 %v2798_v44  ;;  %1617 = vmatprep.subr.bf16.mxu1 %v2844_v52  ;;  %v2903_v52 = vld [vmem:[#allocation2 + $0x33c] ss:$24 sps:$4 sm:$0xff]  }
  0x5a   :  { %1685 = vmatprep.subr.bf16.mxu0 %v2806_v46 }
  0x5c   :  { %1618 = vmatpush1.bf16.msra.mxu1 %v2849_v55  ;;  %v2901_v55 = vld [vmem:[#allocation2 + $0x338] ss:$24 sps:$4 sm:$0xff]  }
  0x5d   :  { %1686 = vmatpush1.bf16.msra.mxu0 %v2804_v49  ;;  %1619 = vmatprep.subr.bf16.mxu1 %v2850_v57  ;;  %v2892_v49 = vld [vmem:[#allocation2 + $0x300] ss:$24 sps:$4 sm:$0xff]   ;;  %v2909_v57 = vld [vmem:[#allocation2 + $0x36c] ss:$24 sps:$4 sm:$0xff]  }
  0x5e   :  { %1687 = vmatprep.subr.bf16.mxu0 %v2812_v50  ;;  %v2895_v50 = vld [vmem:[#allocation2 + $0x308] ss:$24 sps:$4 sm:$0xff]  }
  0x60   :  { %1620 = vmatpush1.bf16.msra.mxu1 %v2855_v59  ;;  %v2907_v59 = vld [vmem:[#allocation2 + $0x368] ss:$24 sps:$4 sm:$0xff]  }
  0x61   :  { %1688 = vmatpush1.bf16.msra.mxu0 %v2810_v53  ;;  %1621 = vmatprep.subr.bf16.mxu1 %v2856_v60  ;;  %v2912_v60 = vld [vmem:[#allocation2 + $0x394] ss:$24 sps:$4 sm:$0xff]  }
  0x62   :  { %1689 = vmatprep.subr.bf16.mxu0 %v2818_v54  ;;  %v2898_v54 = vld [vmem:[#allocation2 + $0x330] ss:$24 sps:$4 sm:$0xff]  }
  0x64   :  { %1622 = vmatpush1.bf16.msra.mxu1 %v2861_v63  ;;  %v2913_v63 = vld [vmem:[#allocation2 + $0x398] ss:$24 sps:$4 sm:$0xff]  }
  0x65   :  { %1690 = vmatpush1.bf16.msra.mxu0 %v2816_v56  ;;  %1623 = vmatprep.subr.bf16.mxu1 %v2862_v0  ;;  %v2906_v56 = vld [vmem:[#allocation2 + $0x364] ss:$24 sps:$4 sm:$0xff]  }
  0x66   :  { %1691 = vmatprep.subr.bf16.mxu0 %v2824_v58  ;;  %v2904_v58 = vld [vmem:[#allocation2 + $0x360] ss:$24 sps:$4 sm:$0xff]   ;;  %v2918_v0 = vld [vmem:[#allocation2 + $0x3c4] ss:$24 sps:$4 sm:$0xff]  }
  0x68   :  { %1624 = vmatpush1.bf16.msra.mxu1 %v2867_v3  ;;  %v2919_v3 = vld [vmem:[#allocation2 + $0x3c8] ss:$24 sps:$4 sm:$0xff]  }
  0x69   :  { %1692 = vmatpush1.bf16.msra.mxu0 %v2822_v61  ;;  %1625 = vmatprep.subr.bf16.mxu1 %v2868_v5  ;;  %v2915_v61 = vld [vmem:[#allocation2 + $0x39c] ss:$24 sps:$4 sm:$0xff]  }
  0x6a   :  { %1693 = vmatprep.subr.bf16.mxu0 %v2830_v62  ;;  %v2910_v62 = vld [vmem:[#allocation2 + $0x390] ss:$24 sps:$4 sm:$0xff]   ;;  %v2924_v5 = vld [vmem:[#allocation2 + $0x3f4] ss:$24 sps:$4 sm:$0xff]  }
  0x6c   :  { %1626 = vmatpush1.bf16.msra.mxu1 %v2873_v8  ;;  %v2925_v8 = vld [vmem:[#allocation2 + $0x3f8] ss:$24 sps:$4 sm:$0xff]  }
  0x6d   :  { %1694 = vmatpush1.bf16.msra.mxu0 %v2828_v1  ;;  %1627 = vmatprep.subr.bf16.mxu1 %v2874_v20  ;;  %v2921_v1 = vld [vmem:[#allocation2 + $0x3cc] ss:$24 sps:$4 sm:$0xff]   ;;  %v2943_v20 = vld [vmem:[#allocation2 + $0x488] ss:$24 sps:$4 sm:$0xff]  }
  0x6e   :  { %1695 = vmatprep.subr.bf16.mxu0 %v2836_v2  ;;  %v2916_v2 = vld [vmem:[#allocation2 + $0x3c0] ss:$24 sps:$4 sm:$0xff]  }
  0x70   :  { %1628 = vmatpush1.bf16.msra.mxu1 %v2879_v23  ;;  %v2946_v23 = vld [vmem:[#allocation2 + $0x4b0] ss:$24 sps:$4 sm:$0xff]  }
  0x71   :  { %1696 = vmatpush1.bf16.msra.mxu0 %v2834_v6  ;;  %1629 = vmatprep.subr.bf16.mxu1 %v2880_v24  ;;  %v2927_v6 = vld [vmem:[#allocation2 + $0x3fc] ss:$24 sps:$4 sm:$0xff]   ;;  %v2949_v24 = vld [vmem:[#allocation2 + $0x4b8] ss:$24 sps:$4 sm:$0xff]  }
  0x72   :  { %1697 = vmatprep.subr.bf16.mxu0 %v2842_v7  ;;  %v2922_v7 = vld [vmem:[#allocation2 + $0x3f0] ss:$24 sps:$4 sm:$0xff]  }
  0x74   :  { %1630 = vmatpush1.bf16.msra.mxu1 %v2885_v27  ;;  %v2952_v27 = vld [vmem:[#allocation2 + $0x4e0] ss:$24 sps:$4 sm:$0xff]  }
  0x75   :  { %1698 = vmatpush1.bf16.msra.mxu0 %v2840_v9  ;;  %1631 = vmatprep.subr.bf16.mxu1 %v2886_v28  ;;  %v2930_v9 = vld [vmem:[#allocation2 + $0x424] ss:$24 sps:$4 sm:$0xff]   ;;  %v2955_v28 = vld [vmem:[#allocation2 + $0x4e8] ss:$24 sps:$4 sm:$0xff]  }
  0x76   :  { %1699 = vmatprep.subr.bf16.mxu0 %v2848_v10  ;;  %v2933_v10 = vld [vmem:[#allocation2 + $0x42c] ss:$24 sps:$4 sm:$0xff]  }
  0x78   :  { %1632 = vmatpush1.bf16.msra.mxu1 %v2891_v31  ;;  %v2958_v31 = vld [vmem:[#allocation2 + $0x510] ss:$24 sps:$4 sm:$0xff]  }
  0x79   :  { %1700 = vmatpush1.bf16.msra.mxu0 %v2846_v11  ;;  %1642 = vmatprep.subr.bf16.mxu1 %v2894_v32  ;;  %v2928_v11 = vld [vmem:[#allocation2 + $0x420] ss:$24 sps:$4 sm:$0xff]  }
  0x7a   :  { %1701 = vmatprep.subr.bf16.mxu0 %v2854_v12  ;;  %v2931_v12 = vld [vmem:[#allocation2 + $0x428] ss:$24 sps:$4 sm:$0xff]   ;;  %v2961_v32 = vld [vmem:[#allocation2 + $0x518] ss:$24 sps:$4 sm:$0xff]  }
  0x7d   :  { %1702 = vmatpush1.bf16.msra.mxu0 %v2852_v13  ;;  %v2936_v13 = vld [vmem:[#allocation2 + $0x454] ss:$24 sps:$4 sm:$0xff]  }
  0x7e   :  { %1703 = vmatprep.subr.bf16.mxu0 %v2860_v14  ;;  %v2939_v14 = vld [vmem:[#allocation2 + $0x45c] ss:$24 sps:$4 sm:$0xff]  }
  0x81   :  { %1704 = vmatpush1.bf16.msra.mxu0 %v2858_v15  ;;  %v2934_v15 = vld [vmem:[#allocation2 + $0x450] ss:$24 sps:$4 sm:$0xff]  }
  0x82   :  { %1705 = vmatprep.subr.bf16.mxu0 %v2866_v16  ;;  %v2937_v16 = vld [vmem:[#allocation2 + $0x458] ss:$24 sps:$4 sm:$0xff]  }
  0x85   :  { %1706 = vmatpush1.bf16.msra.mxu0 %v2864_v17  ;;  %v2942_v17 = vld [vmem:[#allocation2 + $0x484] ss:$24 sps:$4 sm:$0xff]  }
  0x86   :  { %1707 = vmatprep.subr.bf16.mxu0 %v2872_v18  ;;  %v2945_v18 = vld [vmem:[#allocation2 + $0x48c] ss:$24 sps:$4 sm:$0xff]  }
  0x89   :  { %1708 = vmatpush1.bf16.msra.mxu0 %v2870_v19  ;;  %v2940_v19 = vld [vmem:[#allocation2 + $0x480] ss:$24 sps:$4 sm:$0xff]  }
  0x8a   :  { %1709 = vmatprep.subr.bf16.mxu0 %v2878_v21  ;;  %v2948_v21 = vld [vmem:[#allocation2 + $0x4b4] ss:$24 sps:$4 sm:$0xff]  }
  0x8d   :  { %1710 = vmatpush1.bf16.msra.mxu0 %v2876_v22  ;;  %v2951_v22 = vld [vmem:[#allocation2 + $0x4bc] ss:$24 sps:$4 sm:$0xff]  }
  0x8e   :  { %1711 = vmatprep.subr.bf16.mxu0 %v2884_v25  ;;  %v2954_v25 = vld [vmem:[#allocation2 + $0x4e4] ss:$24 sps:$4 sm:$0xff]  }
  0x91   :  { %1712 = vmatpush1.bf16.msra.mxu0 %v2882_v26  ;;  %v2957_v26 = vld [vmem:[#allocation2 + $0x4ec] ss:$24 sps:$4 sm:$0xff]  }
  0x92   :  { %1713 = vmatprep.subr.bf16.mxu0 %v2890_v29  ;;  %v2960_v29 = vld [vmem:[#allocation2 + $0x514] ss:$24 sps:$4 sm:$0xff]  }
  0x95   :  { %1714 = vmatpush1.bf16.msra.mxu0 %v2888_v30  ;;  %v2963_v30 = vld [vmem:[#allocation2 + $0x51c] ss:$24 sps:$4 sm:$0xff]  }
  0x96   :  { %1724 = vmatprep.subr.bf16.mxu0 %v2897_v33  ;;  %v2966_v33 = vld [vmem:[#allocation2 + $0x544] ss:$24 sps:$4 sm:$0xff]  }
 0x12b   :  { %v2767_v35 = vpop.f32.mrb[0].mxu0 }
 0x12c   :  { %v399_v36 = vadd.f32 %v2767_v35, %v2450_v34  ;;  %v390_v37 = vpop.f32.mrb[1].mxu0  ;;  %v2964_v35 = vld [vmem:[#allocation2 + $0x540] ss:$24 sps:$4 sm:$0xff]  }
 0x12d   :  { %v391_v38 = vadd.f32 %v2450_v34, %v390_v37  ;;  %v2768_v39 = vpop.f32.mrb[2].mxu0  ;;  %v2972_v37 = vld [vmem:[#allocation2 + $0x574] ss:$24 sps:$4 sm:$0xff]  }
 0x12e   :  { %v402_v40 = vadd.f32 %v2768_v39, %v2450_v34  ;;  %v393_v41 = vpop.f32.mrb[3].mxu0  ;;  %v407_v42 = vmax.f32 %v399_v36, 0.0  ;;  %v2967_v36 = vld [vmem:[#allocation2 + $0x548] ss:$24 sps:$4 sm:$0xff]  }
 0x12f   :  { %v394_v4 = vadd.f32 %v2450_v34, %v393_v41  ;;  %v405_v44 = vmax.f32 %v391_v38, 0.0  ;;  %v2969_v34 = vld [vmem:[#allocation2 + $0x54c] ss:$24 sps:$4 sm:$0xff]   ;;  %v2975_v38 = vld [vmem:[#allocation2 + $0x57c] ss:$24 sps:$4 sm:$0xff]  }
 0x130   :  { %v408_v43 = vmax.f32 %v402_v40, 0.0  ;;  %v2970_v39 = vld [vmem:[#allocation2 + $0x570] ss:$24 sps:$4 sm:$0xff]   ;;  %v2978_v41 = vld [vmem:[#allocation2 + $0x5a4] ss:$24 sps:$4 sm:$0xff]  }
 0x131   :  { %v406_v45 = vmax.f32 %v394_v4, 0.0  ;;  %v2973_v40 = vld [vmem:[#allocation2 + $0x578] ss:$24 sps:$4 sm:$0xff]   ;;  %v2981_v4 = vld [vmem:[#allocation2 + $0x5ac] ss:$24 sps:$4 sm:$0xff]  }
 0x132   :  { %v3540_v46 = vpack.c.bf16 %v408_v43, %v407_v42  ;;  %v2976_v42 = vld [vmem:[#allocation2 + $0x5a0] ss:$24 sps:$4 sm:$0xff]  }
 0x133   :  { %v3542_v47 = vpack.c.bf16 %v406_v45, %v405_v44  ;;  %v2979_v43 = vld [vmem:[#allocation2 + $0x5a8] ss:$24 sps:$4 sm:$0xff]   ;;  %v2984_v44 = vld [vmem:[#allocation2 + $0x5d4] ss:$24 sps:$4 sm:$0xff]  }
 0x134   :  { %v3552_v53 = vrot.slane %v3540_v46, 4  ;;  %v2987_v45 = vld [vmem:[#allocation2 + $0x5dc] ss:$24 sps:$4 sm:$0xff]  }
 0x135   :  { %v3545_v48 = vrot.slane %v3542_v47, 4 }
 0x137   :  { %1633 = vmatprep.mubr.bf16.mxu1 %v3545_v48  ;;  %1715 = vmatprep.mubr.bf16.mxu0 %v3545_v48 }
 0x138   :  { %1634 = vmatmul.mubr.bf16.vlgmr.msra.gmra.mrb[0].mxu1 %v3542_v47  ;;  %1716 = vmatmul.mubr.bf16.vlgmr.msra.gmra.mrb[4].mxu0 %v3542_v47 }
 0x139   :  { %1643 = vmatpush1.bf16.msra.mxu1 %v2892_v49  ;;  %1725 = vmatpush1.bf16.msra.mxu0 %v2895_v50  ;;  %v2982_v49 = vld [vmem:[#allocation2 + $0x5d0] ss:$24 sps:$4 sm:$0xff]  }
 0x13a   :  { %1674 = vmatprep.mubr.bf16.mxu1 %v3552_v53  ;;  %1756 = vmatprep.mubr.bf16.mxu0 %v3552_v53  ;;  %v2985_v50 = vld [vmem:[#allocation2 + $0x5d8] ss:$24 sps:$4 sm:$0xff]  }
 0x13b   :  { %1644 = vmatprep.subr.bf16.mxu1 %v2900_v51  ;;  %1726 = vmatprep.subr.bf16.mxu0 %v2903_v52  ;;  %v2990_v51 = vld [vmem:[#allocation2 + $0x14] ss:$24 sps:$4 sm:$0xff]   ;;  %v2988_v52 = vld [vmem:[#allocation2 + $0x10] ss:$24 sps:$4 sm:$0xff]  }
 0x13d   :  { %1645 = vmatpush1.bf16.msra.mxu1 %v2898_v54  ;;  %1727 = vmatpush1.bf16.msra.mxu0 %v2901_v55  ;;  %v2993_v54 = vld [vmem:[#allocation2 + $0x44] ss:$24 sps:$4 sm:$0xff]  }
 0x13e   :  { %1646 = vmatprep.subr.bf16.mxu1 %v2906_v56  ;;  %1728 = vmatprep.subr.bf16.mxu0 %v2909_v57  ;;  %v3084_v55 = vld [vmem:[#allocation5 + $0x40] sm:$0xff]   ;;  %v3086_v57 = vld [vmem:[#allocation5 + $0x48] sm:$0xff]  }
 0x13f   :  { %v3085_v56 = vld [vmem:[#allocation5] sm:$0xff]  }
 0x141   :  { %1647 = vmatpush1.bf16.msra.mxu1 %v2904_v58  ;;  %1729 = vmatpush1.bf16.msra.mxu0 %v2907_v59  ;;  %v2991_v58 = vld [vmem:[#allocation2 + $0x40] ss:$24 sps:$4 sm:$0xff]   ;;  %v2996_v59 = vld [vmem:[#allocation2 + $0x74] ss:$24 sps:$4 sm:$0xff]  }
 0x142   :  { %1648 = vmatprep.subr.bf16.mxu1 %v2912_v60  ;;  %1730 = vmatprep.subr.bf16.mxu0 %v2915_v61  ;;  %v3087_v60 = vld [vmem:[#allocation5 + $0x8] sm:$0xff]   ;;  %v3088_v61 = vld [vmem:[#allocation5 + $0x50] sm:$0xff]  }
 0x145   :  { %1649 = vmatpush1.bf16.msra.mxu1 %v2910_v62  ;;  %1731 = vmatpush1.bf16.msra.mxu0 %v2913_v63  ;;  %v2994_v62 = vld [vmem:[#allocation2 + $0x70] ss:$24 sps:$4 sm:$0xff]   ;;  %v2999_v63 = vld [vmem:[#allocation2 + $0xa4] ss:$24 sps:$4 sm:$0xff]  }
 0x146   :  { %1650 = vmatprep.subr.bf16.mxu1 %v2918_v0  ;;  %1732 = vmatprep.subr.bf16.mxu0 %v2921_v1  ;;  %v3089_v0 = vld [vmem:[#allocation5 + $0x10] sm:$0xff]   ;;  %v3090_v1 = vld [vmem:[#allocation5 + $0x58] sm:$0xff]  }
 0x149   :  { %1651 = vmatpush1.bf16.msra.mxu1 %v2916_v2  ;;  %1733 = vmatpush1.bf16.msra.mxu0 %v2919_v3  ;;  %v2997_v2 = vld [vmem:[#allocation2 + $0xa0] ss:$24 sps:$4 sm:$0xff]  }
 0x14a   :  { %1652 = vmatprep.subr.bf16.mxu1 %v2924_v5  ;;  %1734 = vmatprep.subr.bf16.mxu0 %v2927_v6  ;;  %v3091_v3 = vld [vmem:[#allocation5 + $0x18] sm:$0xff]   ;;  %v3092_v5 = vld [vmem:[#allocation5 + $0x60] sm:$0xff]   ;;  %v3000_v6 = vld [vmem:[#allocation2 + $0xd0] ss:$24 sps:$4 sm:$0xff]  }
 0x14d   :  { %1653 = vmatpush1.bf16.msra.mxu1 %v2922_v7  ;;  %1735 = vmatpush1.bf16.msra.mxu0 %v2925_v8  ;;  %v3005_v7 = vld [vmem:[#allocation2 + $0x104] ss:$24 sps:$4 sm:$0xff]  }
 0x14e   :  { %1654 = vmatprep.subr.bf16.mxu1 %v2930_v9  ;;  %1736 = vmatprep.subr.bf16.mxu0 %v2933_v10  ;;  %v3093_v8 = vld [vmem:[#allocation5 + $0x20] sm:$0xff]   ;;  %v3094_v9 = vld [vmem:[#allocation5 + $0x68] sm:$0xff]  }
 0x14f   :  { %v3003_v10 = vld [vmem:[#allocation2 + $0x100] ss:$24 sps:$4 sm:$0xff]  }
 0x151   :  { %1655 = vmatpush1.bf16.msra.mxu1 %v2928_v11  ;;  %1737 = vmatpush1.bf16.msra.mxu0 %v2931_v12  ;;  %v3008_v11 = vld [vmem:[#allocation2 + $0x134] ss:$24 sps:$4 sm:$0xff]  }
 0x152   :  { %1656 = vmatprep.subr.bf16.mxu1 %v2936_v13  ;;  %1738 = vmatprep.subr.bf16.mxu0 %v2939_v14  ;;  %v3095_v12 = vld [vmem:[#allocation5 + $0x28] sm:$0xff]   ;;  %v3011_v14 = vld [vmem:[#allocation2 + $0x164] ss:$24 sps:$4 sm:$0xff]  }
 0x153   :  { %v3006_v13 = vld [vmem:[#allocation2 + $0x130] ss:$24 sps:$4 sm:$0xff]  }
 0x155   :  { %1657 = vmatpush1.bf16.msra.mxu1 %v2934_v15  ;;  %1739 = vmatpush1.bf16.msra.mxu0 %v2937_v16  ;;  %v3009_v15 = vld [vmem:[#allocation2 + $0x160] ss:$24 sps:$4 sm:$0xff]   ;;  %v3014_v16 = vld [vmem:[#allocation2 + $0x194] ss:$24 sps:$4 sm:$0xff]  }
 0x156   :  { %1658 = vmatprep.subr.bf16.mxu1 %v2942_v17  ;;  %1740 = vmatprep.subr.bf16.mxu0 %v2945_v18  ;;  %v3012_v17 = vld [vmem:[#allocation2 + $0x190] ss:$24 sps:$4 sm:$0xff]   ;;  %v3017_v18 = vld [vmem:[#allocation2 + $0x1c4] ss:$24 sps:$4 sm:$0xff]  }
 0x159   :  { %1659 = vmatpush1.bf16.msra.mxu1 %v2940_v19  ;;  %1741 = vmatpush1.bf16.msra.mxu0 %v2943_v20  ;;  %v3015_v19 = vld [vmem:[#allocation2 + $0x1c0] ss:$24 sps:$4 sm:$0xff]   ;;  %v3020_v20 = vld [vmem:[#allocation2 + $0x1f4] ss:$24 sps:$4 sm:$0xff]  }
 0x15a   :  { %1660 = vmatprep.subr.bf16.mxu1 %v2948_v21  ;;  %1742 = vmatprep.subr.bf16.mxu0 %v2951_v22  ;;  %v3018_v21 = vld [vmem:[#allocation2 + $0x1f0] ss:$24 sps:$4 sm:$0xff]   ;;  %v3023_v22 = vld [vmem:[#allocation2 + $0x224] ss:$24 sps:$4 sm:$0xff]  }
 0x15d   :  { %1661 = vmatpush1.bf16.msra.mxu1 %v2946_v23  ;;  %1743 = vmatpush1.bf16.msra.mxu0 %v2949_v24  ;;  %v3021_v23 = vld [vmem:[#allocation2 + $0x220] ss:$24 sps:$4 sm:$0xff]   ;;  %v3026_v24 = vld [vmem:[#allocation2 + $0x254] ss:$24 sps:$4 sm:$0xff]  }
 0x15e   :  { %1662 = vmatprep.subr.bf16.mxu1 %v2954_v25  ;;  %1744 = vmatprep.subr.bf16.mxu0 %v2957_v26  ;;  %v3024_v25 = vld [vmem:[#allocation2 + $0x250] ss:$24 sps:$4 sm:$0xff]   ;;  %v3029_v26 = vld [vmem:[#allocation2 + $0x284] ss:$24 sps:$4 sm:$0xff]  }
 0x161   :  { %1663 = vmatpush1.bf16.msra.mxu1 %v2952_v27  ;;  %1745 = vmatpush1.bf16.msra.mxu0 %v2955_v28  ;;  %v3027_v27 = vld [vmem:[#allocation2 + $0x280] ss:$24 sps:$4 sm:$0xff]   ;;  %v3032_v28 = vld [vmem:[#allocation2 + $0x2b4] ss:$24 sps:$4 sm:$0xff]  }
 0x162   :  { %1664 = vmatprep.subr.bf16.mxu1 %v2960_v29  ;;  %1746 = vmatprep.subr.bf16.mxu0 %v2963_v30  ;;  %v3030_v29 = vld [vmem:[#allocation2 + $0x2b0] ss:$24 sps:$4 sm:$0xff]   ;;  %v3035_v30 = vld [vmem:[#allocation2 + $0x2e4] ss:$24 sps:$4 sm:$0xff]  }
 0x165   :  { %1665 = vmatpush1.bf16.msra.mxu1 %v2958_v31  ;;  %1747 = vmatpush1.bf16.msra.mxu0 %v2961_v32  ;;  %v3033_v31 = vld [vmem:[#allocation2 + $0x2e0] ss:$24 sps:$4 sm:$0xff]   ;;  %v3038_v32 = vld [vmem:[#allocation2 + $0x314] ss:$24 sps:$4 sm:$0xff]  }
 0x166   :  { %1666 = vmatprep.subr.bf16.mxu1 %v2966_v33  ;;  %1748 = vmatprep.subr.bf16.mxu0 %v2969_v34  ;;  %v3036_v33 = vld [vmem:[#allocation2 + $0x310] ss:$24 sps:$4 sm:$0xff]   ;;  %v3041_v34 = vld [vmem:[#allocation2 + $0x344] ss:$24 sps:$4 sm:$0xff]  }
 0x169   :  { %1667 = vmatpush1.bf16.msra.mxu1 %v2964_v35  ;;  %1749 = vmatpush1.bf16.msra.mxu0 %v2967_v36  ;;  %v3039_v35 = vld [vmem:[#allocation2 + $0x340] ss:$24 sps:$4 sm:$0xff]   ;;  %v3044_v36 = vld [vmem:[#allocation2 + $0x374] ss:$24 sps:$4 sm:$0xff]  }
 0x16a   :  { %1668 = vmatprep.subr.bf16.mxu1 %v2972_v37  ;;  %1750 = vmatprep.subr.bf16.mxu0 %v2975_v38  ;;  %v3042_v37 = vld [vmem:[#allocation2 + $0x370] ss:$24 sps:$4 sm:$0xff]   ;;  %v3047_v38 = vld [vmem:[#allocation2 + $0x3a4] ss:$24 sps:$4 sm:$0xff]  }
 0x16d   :  { %1669 = vmatpush1.bf16.msra.mxu1 %v2970_v39  ;;  %1751 = vmatpush1.bf16.msra.mxu0 %v2973_v40  ;;  %v3045_v39 = vld [vmem:[#allocation2 + $0x3a0] ss:$24 sps:$4 sm:$0xff]   ;;  %v3050_v40 = vld [vmem:[#allocation2 + $0x3d4] ss:$24 sps:$4 sm:$0xff]  }
 0x16e   :  { %1670 = vmatprep.subr.bf16.mxu1 %v2978_v41  ;;  %1752 = vmatprep.subr.bf16.mxu0 %v2981_v4  ;;  %v3048_v41 = vld [vmem:[#allocation2 + $0x3d0] ss:$24 sps:$4 sm:$0xff]   ;;  %v3053_v4 = vld [vmem:[#allocation2 + $0x404] ss:$24 sps:$4 sm:$0xff]  }
 0x171   :  { %1671 = vmatpush1.bf16.msra.mxu1 %v2976_v42  ;;  %1753 = vmatpush1.bf16.msra.mxu0 %v2979_v43  ;;  %v3096_v42 = vld [vmem:[#allocation5 + $0x70] sm:$0xff]  }
 0x172   :  { %1672 = vmatprep.subr.bf16.mxu1 %v2984_v44  ;;  %1754 = vmatprep.subr.bf16.mxu0 %v2987_v45  ;;  %v3097_v43 = vld [vmem:[#allocation5 + $0x30] sm:$0xff]   ;;  %v3098_v45 = vld [vmem:[#allocation5 + $0x78] sm:$0xff]  }
 0x173   :  { %v3054_v44 = vld [vmem:[#allocation2 + $0x430] ss:$24 sps:$4 sm:$0xff]  }
 0x175   :  { %1673 = vmatpush1.bf16.msra.mxu1 %v2982_v49  ;;  %1755 = vmatpush1.bf16.msra.mxu0 %v2985_v50  ;;  %v3059_v49 = vld [vmem:[#allocation2 + $0x464] ss:$24 sps:$4 sm:$0xff]  }
 0x176   :  { %1765 = vmatprep.subr.bf16.mxu1 %v2990_v51  ;;  %2697 = vmatprep.subr.bf16.mxu0 %v3084_v55  ;;  %v3099_v50 = vld [vmem:[#allocation5 + $0x38] sm:$0xff]   ;;  %v3060_v55 = vld [vmem:[#allocation2 + $0x490] ss:$24 sps:$4 sm:$0xff]  }
 0x177   :  { %v3057_v51 = vld [vmem:[#allocation2 + $0x460] ss:$24 sps:$4 sm:$0xff]  }
 0x178   :  { %1675 = vmatmul.mubr.bf16.vlgmr.msra.gmra.mrb[0].mxu1 %v3540_v46  ;;  %1757 = vmatmul.mubr.bf16.vlgmr.msra.gmra.mrb[4].mxu0 %v3540_v46 }
 0x179   :  { %1766 = vmatpush1.bf16.msra.mxu1 %v2988_v52  ;;  %1797 = vmatprep.mubr.bf16.mxu1 %v3545_v48  ;;  %v3002_v48 = vld [vmem:[#allocation2 + $0xd4] ss:$24 sps:$4 sm:$0xff]   ;;  %v3100_v52 = vld [vmem:[#allocation5 + $0xc0] sm:$0xff]  }
 0x17a   :  { %1767 = vmatprep.subr.bf16.mxu1 %v2993_v54  ;;  %2698 = vmatpush3.bf16.msra.mxu0 %v3085_v56  ;;  %v3062_v54 = vld [vmem:[#allocation2 + $0x494] ss:$24 sps:$4 sm:$0xff]   ;;  %v3065_v56 = vld [vmem:[#allocation2 + $0x4c4] ss:$24 sps:$4 sm:$0xff]  }
 0x17b   :  { %2699 = vmatprep.subr.bf16.mxu0 %v3086_v57  ;;  %v3063_v57 = vld [vmem:[#allocation2 + $0x4c0] ss:$24 sps:$4 sm:$0xff]  }
 0x17d   :  { %1768 = vmatpush1.bf16.msra.mxu1 %v2991_v58  ;;  %v3068_v58 = vld [vmem:[#allocation2 + $0x4f4] ss:$24 sps:$4 sm:$0xff]  }
 0x17e   :  { %1769 = vmatprep.subr.bf16.mxu1 %v2996_v59  ;;  %2700 = vmatpush3.bf16.msra.mxu0 %v3087_v60  ;;  %v3066_v59 = vld [vmem:[#allocation2 + $0x4f0] ss:$24 sps:$4 sm:$0xff]   ;;  %v3071_v60 = vld [vmem:[#allocation2 + $0x524] ss:$24 sps:$4 sm:$0xff]  }
 0x17f   :  { %2701 = vmatprep.subr.bf16.mxu0 %v3088_v61  ;;  %v3069_v61 = vld [vmem:[#allocation2 + $0x520] ss:$24 sps:$4 sm:$0xff]  }
 0x181   :  { %1770 = vmatpush1.bf16.msra.mxu1 %v2994_v62  ;;  %v3074_v62 = vld [vmem:[#allocation2 + $0x554] ss:$24 sps:$4 sm:$0xff]  }
 0x182   :  { %1771 = vmatprep.subr.bf16.mxu1 %v2999_v63  ;;  %2702 = vmatpush3.bf16.msra.mxu0 %v3089_v0  ;;  %v3072_v63 = vld [vmem:[#allocation2 + $0x550] ss:$24 sps:$4 sm:$0xff]   ;;  %v3077_v0 = vld [vmem:[#allocation2 + $0x584] ss:$24 sps:$4 sm:$0xff]  }
 0x183   :  { %2703 = vmatprep.subr.bf16.mxu0 %v3090_v1  ;;  %v3075_v1 = vld [vmem:[#allocation2 + $0x580] ss:$24 sps:$4 sm:$0xff]  }
 0x185   :  { %1772 = vmatpush1.bf16.msra.mxu1 %v2997_v2  ;;  %v3080_v2 = vld [vmem:[#allocation2 + $0x5b4] ss:$24 sps:$4 sm:$0xff]  }
 0x186   :  { %1773 = vmatprep.subr.bf16.mxu1 %v3002_v48  ;;  %2704 = vmatpush3.bf16.msra.mxu0 %v3091_v3  ;;  %v3078_v48 = vld [vmem:[#allocation2 + $0x5b0] ss:$24 sps:$4 sm:$0xff]   ;;  %v3083_v3 = vld [vmem:[#allocation2 + $0x5e4] ss:$24 sps:$4 sm:$0xff]  }
 0x187   :  { %2705 = vmatprep.subr.bf16.mxu0 %v3092_v5  ;;  %v3081_v5 = vld [vmem:[#allocation2 + $0x5e0] ss:$24 sps:$4 sm:$0xff]  }
 0x189   :  { %1774 = vmatpush1.bf16.msra.mxu1 %v3000_v6  ;;  %v611_v6 = vlaneseq }
 0x18a   :  { %1775 = vmatprep.subr.bf16.mxu1 %v3005_v7  ;;  %2706 = vmatpush3.bf16.msra.mxu0 %v3093_v8 }
 0x18b   :  { %2707 = vmatprep.subr.bf16.mxu0 %v3094_v9  ;;  %v3562_v7 = vshrl.u32 %v611_v6, 7  ;;  %v3568_v9 = vld [vmem:[%s3600_s4] sm:$0x3f] }
 0x18d   :  { %1776 = vmatpush1.bf16.msra.mxu1 %v3003_v10  ;;  %v613_v8 = vsub.s32 0, %v3562_v7  ;;  %v617_v10 = vsub.s32 1, %v3562_v7 }
 0x18e   :  { %1777 = vmatprep.subr.bf16.mxu1 %v3008_v11  ;;  %2708 = vmatpush3.bf16.msra.mxu0 %v3095_v12  ;;  %v625_v11 = vsub.s32 3, %v3562_v7 }
 0x18f   :  { %2709 = vmatprep.subr.bf16.mxu0 %v3096_v42  ;;  %v614_v12 = vrot.slane %v3568_v9, %v613_v8  ;;  %v3112_v42 = vld [vmem:[#allocation5 + $0xf0] sm:$0xff]  }
 0x191   :  { %1778 = vmatpush1.bf16.msra.mxu1 %v3006_v13  ;;  %v618_v13 = vrot.slane %v3568_v9, %v617_v10 }
 0x192   :  { %1779 = vmatprep.subr.bf16.mxu1 %v3011_v14  ;;  %2710 = vmatpush3.bf16.msra.mxu0 %v3097_v43 }
 0x193   :  { %2711 = vmatprep.subr.bf16.mxu0 %v3098_v45  ;;  %v3115_v45 = vld [vmem:[#allocation5 + $0xb8] sm:$0xff]  }
 0x195   :  { %1780 = vmatpush1.bf16.msra.mxu1 %v3009_v15 }
 0x196   :  { %1781 = vmatprep.subr.bf16.mxu1 %v3014_v16  ;;  %2712 = vmatpush3.bf16.msra.mxu0 %v3099_v50  ;;  %v3116_v50 = vld [vmem:[#allocation5 + $0x140] sm:$0xff]  }
 0x197   :  { %2719 = vmatprep.subr.bf16.mxu0 %v3100_v52 }
 0x199   :  { %1782 = vmatpush1.bf16.msra.mxu1 %v3012_v17 }
 0x19a   :  { %1783 = vmatprep.subr.bf16.mxu1 %v3017_v18 }
 0x19d   :  { %1784 = vmatpush1.bf16.msra.mxu1 %v3015_v19 }
 0x19e   :  { %1785 = vmatprep.subr.bf16.mxu1 %v3020_v20 }
 0x1a1   :  { %1786 = vmatpush1.bf16.msra.mxu1 %v3018_v21 }
 0x1a2   :  { %1787 = vmatprep.subr.bf16.mxu1 %v3023_v22 }
 0x1a5   :  { %1788 = vmatpush1.bf16.msra.mxu1 %v3021_v23 }
 0x1a6   :  { %1789 = vmatprep.subr.bf16.mxu1 %v3026_v24 }
 0x1a9   :  { %1790 = vmatpush1.bf16.msra.mxu1 %v3024_v25 }
 0x1aa   :  { %1791 = vmatprep.subr.bf16.mxu1 %v3029_v26 }
 0x1ad   :  { %1792 = vmatpush1.bf16.msra.mxu1 %v3027_v27 }
 0x1ae   :  { %1793 = vmatprep.subr.bf16.mxu1 %v3032_v28 }
 0x1b1   :  { %1794 = vmatpush1.bf16.msra.mxu1 %v3030_v29  ;;  %v3101_v29 = vld [vmem:[#allocation5 + $0x80] sm:$0xff]  }
 0x1b2   :  { %1795 = vmatprep.subr.bf16.mxu1 %v3035_v30 }
 0x1b5   :  { %1796 = vmatpush1.bf16.msra.mxu1 %v3033_v31  ;;  %v3102_v31 = vld [vmem:[#allocation5 + $0xc8] sm:$0xff]  }
 0x1b6   :  { %1806 = vmatprep.subr.bf16.mxu1 %v3038_v32 }
 0x1b8   :  { %1798 = vmatmul.mubr.bf16.vlgmr.msra.gmra.mrb[4].mxu1 %v3542_v47  ;;  %v3051_v47 = vld [vmem:[#allocation2 + $0x400] ss:$24 sps:$4 sm:$0xff]  }
 0x1b9   :  { %1807 = vmatpush1.bf16.msra.mxu1 %v3036_v33  ;;  %1838 = vmatprep.mubr.bf16.mxu1 %v3552_v53  ;;  %v3056_v53 = vld [vmem:[#allocation2 + $0x434] ss:$24 sps:$4 sm:$0xff]  }
 0x1ba   :  { %1808 = vmatprep.subr.bf16.mxu1 %v3041_v34  ;;  %v3103_v33 = vld [vmem:[#allocation5 + $0x88] sm:$0xff]   ;;  %v3104_v34 = vld [vmem:[#allocation5 + $0xd0] sm:$0xff]  }
 0x1bd   :  { %1809 = vmatpush1.bf16.msra.mxu1 %v3039_v35  ;;  %v3105_v35 = vld [vmem:[#allocation5 + $0x90] sm:$0xff]  }
 0x1be   :  { %1810 = vmatprep.subr.bf16.mxu1 %v3044_v36  ;;  %v3106_v36 = vld [vmem:[#allocation5 + $0xd8] sm:$0xff]  }
 0x1c1   :  { %1811 = vmatpush1.bf16.msra.mxu1 %v3042_v37  ;;  %v3107_v37 = vld [vmem:[#allocation5 + $0x98] sm:$0xff]  }
 0x1c2   :  { %1812 = vmatprep.subr.bf16.mxu1 %v3047_v38  ;;  %v3108_v38 = vld [vmem:[#allocation5 + $0xe0] sm:$0xff]  }
 0x1c5   :  { %1813 = vmatpush1.bf16.msra.mxu1 %v3045_v39  ;;  %v3109_v39 = vld [vmem:[#allocation5 + $0xa0] sm:$0xff]  }
 0x1c6   :  { %1814 = vmatprep.subr.bf16.mxu1 %v3050_v40  ;;  %v621_v40 = vsub.s32 2, %v3562_v7 }
 0x1c9   :  { %1815 = vmatpush1.bf16.msra.mxu1 %v3048_v41  ;;  %v3110_v41 = vld [vmem:[#allocation5 + $0xe8] sm:$0xff]  }
 0x1ca   :  { %1816 = vmatprep.subr.bf16.mxu1 %v3053_v4  ;;  %v3111_v4 = vld [vmem:[#allocation5 + $0xa8] sm:$0xff]  }
 0x1cd   :  { %1817 = vmatpush1.bf16.msra.mxu1 %v3051_v47  ;;  %v622_v47 = vrot.slane %v3568_v9, %v621_v40 }
 0x1ce   :  { %1818 = vmatprep.subr.bf16.mxu1 %v3056_v53  ;;  %v3113_v53 = vld [vmem:[#allocation5 + $0xb0] sm:$0xff]  }
 0x1d1   :  { %1819 = vmatpush1.bf16.msra.mxu1 %v3054_v44  ;;  %v3114_v44 = vld [vmem:[#allocation5 + $0xf8] sm:$0xff]  }
 0x1d2   :  { %1820 = vmatprep.subr.bf16.mxu1 %v3059_v49 }
 0x1d5   :  { %1821 = vmatpush1.bf16.msra.mxu1 %v3057_v51  ;;  %v3117_v51 = vld [vmem:[#allocation5 + $0x100] sm:$0xff]  }
 0x1d6   :  { %1822 = vmatprep.subr.bf16.mxu1 %v3062_v54  ;;  %v3118_v54 = vld [vmem:[#allocation5 + $0x148] sm:$0xff]  }
 0x1d9   :  { %1823 = vmatpush1.bf16.msra.mxu1 %v3060_v55  ;;  %v3119_v55 = vld [vmem:[#allocation5 + $0x108] sm:$0xff]  }
 0x1da   :  { %1824 = vmatprep.subr.bf16.mxu1 %v3065_v56  ;;  %v3120_v56 = vld [vmem:[#allocation5 + $0x150] sm:$0xff]  }
 0x1dd   :  { %1825 = vmatpush1.bf16.msra.mxu1 %v3063_v57  ;;  %v3121_v57 = vld [vmem:[#allocation5 + $0x110] sm:$0xff]  }
 0x1de   :  { %1826 = vmatprep.subr.bf16.mxu1 %v3068_v58  ;;  %v3122_v58 = vld [vmem:[#allocation5 + $0x158] sm:$0xff]  }
 0x1e1   :  { %1827 = vmatpush1.bf16.msra.mxu1 %v3066_v59  ;;  %v3123_v59 = vld [vmem:[#allocation5 + $0x118] sm:$0xff]  }
 0x1e2   :  { %1828 = vmatprep.subr.bf16.mxu1 %v3071_v60  ;;  %v3124_v60 = vld [vmem:[#allocation5 + $0x160] sm:$0xff]  }
 0x1e5   :  { %1829 = vmatpush1.bf16.msra.mxu1 %v3069_v61  ;;  %v3125_v61 = vld [vmem:[#allocation5 + $0x120] sm:$0xff]  }
 0x1e6   :  { %1830 = vmatprep.subr.bf16.mxu1 %v3074_v62  ;;  %v3126_v62 = vld [vmem:[#allocation5 + $0x168] sm:$0xff]  }
 0x1e9   :  { %1831 = vmatpush1.bf16.msra.mxu1 %v3072_v63  ;;  %v3127_v63 = vld [vmem:[#allocation5 + $0x128] sm:$0xff]  }
 0x1ea   :  { %1832 = vmatprep.subr.bf16.mxu1 %v3077_v0  ;;  %v3128_v0 = vld [vmem:[#allocation5 + $0x170] sm:$0xff]  }
 0x1ed   :  { %1833 = vmatpush1.bf16.msra.mxu1 %v3075_v1  ;;  %v3129_v1 = vld [vmem:[#allocation5 + $0x130] sm:$0xff]  }
 0x1ee   :  { %1834 = vmatprep.subr.bf16.mxu1 %v3080_v2  ;;  %v3130_v2 = vld [vmem:[#allocation5 + $0x178] sm:$0xff]  }
 0x1f1   :  { %1835 = vmatpush1.bf16.msra.mxu1 %v3078_v48  ;;  %v3131_v48 = vld [vmem:[#allocation5 + $0x138] sm:$0xff]  }
 0x1f2   :  { %1836 = vmatprep.subr.bf16.mxu1 %v3083_v3  ;;  %v629_v3 = vsub.s32 4, %v3562_v7 }
 0x1f4   :  { %v630_v6 = vrot.slane %v3568_v9, %v629_v3 }
 0x1f5   :  { %1837 = vmatpush1.bf16.msra.mxu1 %v3081_v5  ;;  %v633_v5 = vsub.s32 5, %v3562_v7 }
 0x1f7   :  { %v634_v8 = vrot.slane %v3568_v9, %v633_v5 }
 0x1f8   :  { %1839 = vmatmul.mubr.bf16.vlgmr.msra.gmra.mrb[4].mxu1 %v3540_v46  ;;  %v626_v46 = vrot.slane %v3568_v9, %v625_v11  ;;  %v2645_v9 = vld [vmem:[%s3602_s6] ss:$0 sm:$0xff] }
 0x24b   :  { %v1676_v14 = vpop.f32.mrb[0].mxu1  ;;  %v1758_v15 = vpop.f32.mrb[4].mxu0 }
 0x24c   :  { %v2769_v16 = vadd.f32 %v1676_v14, %v614_v12  ;;  %v1678_v17 = vpop.f32.mrb[1].mxu1  ;;  %v1760_v18 = vpop.f32.mrb[5].mxu0  ;;  %v2771_v43 = vadd.f32 %v1758_v15, %v622_v47 }
 0x24d   :  { %v2770_v19 = vadd.f32 %v1678_v17, %v618_v13  ;;  %v2772_v20 = vadd.f32 %v1760_v18, %v626_v46  ;;  %v1680_v21 = vpop.f32.mrb[2].mxu1  ;;  %v1762_v22 = vpop.f32.mrb[6].mxu0 }
 0x24e   :  { %v1847_v23 = vmax.f32 %v2769_v16, 0.0  ;;  %v1681_v24 = vpop.f32.mrb[3].mxu1  ;;  %v1763_v25 = vpop.f32.mrb[7].mxu0  ;;  %v1849_v49 = vmax.f32 %v2771_v43, 0.0 }
 0x24f   :  { %v1848_v26 = vmax.f32 %v2770_v19, 0.0  ;;  %v1850_v27 = vmax.f32 %v2772_v20, 0.0 }
 0x250   :  { %v1853_v30 = vpack.c.bf16 %v1847_v23, %v1847_v23  ;;  %v1855_v52 = vpack.c.bf16 %v1849_v49, %v1849_v49 }
 0x251   :  { %v1854_v28 = vpack.c.bf16 %v1848_v26, %v1848_v26  ;;  %v1856_v32 = vpack.c.bf16 %v1850_v27, %v1850_v27 }
 0x253   :  { %2282 = vmatprep.mubr.bf16.mxu0 %v1854_v28 }
 0x254   :  { %2283 = vmatmul.mubr.bf16.vlgmr.msra.gmra.mrb[8].mxu0 %v1853_v30 }
 0x255   :  { %2720 = vmatpush3.bf16.msra.mxu0 %v3101_v29  ;;  %2322 = vmatprep.mubr.bf16.mxu0 %v1856_v32 }
 0x256   :  { %2721 = vmatprep.subr.bf16.mxu0 %v3102_v31 }
 0x259   :  { %2722 = vmatpush3.bf16.msra.mxu0 %v3103_v33 }
 0x25a   :  { %2723 = vmatprep.subr.bf16.mxu0 %v3104_v34 }
 0x25d   :  { %2724 = vmatpush3.bf16.msra.mxu0 %v3105_v35 }
 0x25e   :  { %2725 = vmatprep.subr.bf16.mxu0 %v3106_v36 }
 0x261   :  { %2726 = vmatpush3.bf16.msra.mxu0 %v3107_v37 }
 0x262   :  { %2727 = vmatprep.subr.bf16.mxu0 %v3108_v38 }
 0x265   :  { %2728 = vmatpush3.bf16.msra.mxu0 %v3109_v39 }
 0x266   :  { %2729 = vmatprep.subr.bf16.mxu0 %v3110_v41 }
 0x269   :  { %2730 = vmatpush3.bf16.msra.mxu0 %v3111_v4 }
 0x26a   :  { %2731 = vmatprep.subr.bf16.mxu0 %v3112_v42 }
 0x26d   :  { %2732 = vmatpush3.bf16.msra.mxu0 %v3113_v53 }
 0x26e   :  { %2733 = vmatprep.subr.bf16.mxu0 %v3114_v44 }
 0x271   :  { %2734 = vmatpush3.bf16.msra.mxu0 %v3115_v45 }
 0x272   :  { %2741 = vmatprep.subr.bf16.mxu0 %v3116_v50 }
 0x274   :  { %2323 = vmatmul.mubr.bf16.vlgmr.msra.gmra.mrb[12].mxu0 %v1855_v52 }
 0x275   :  { %2742 = vmatpush3.bf16.msra.mxu0 %v3117_v51 }
 0x276   :  { %2743 = vmatprep.subr.bf16.mxu0 %v3118_v54 }
 0x279   :  { %2744 = vmatpush3.bf16.msra.mxu0 %v3119_v55 }
 0x27a   :  { %2745 = vmatprep.subr.bf16.mxu0 %v3120_v56 }
 0x27d   :  { %2746 = vmatpush3.bf16.msra.mxu0 %v3121_v57 }
 0x27e   :  { %2747 = vmatprep.subr.bf16.mxu0 %v3122_v58 }
 0x281   :  { %2748 = vmatpush3.bf16.msra.mxu0 %v3123_v59 }
 0x282   :  { %2749 = vmatprep.subr.bf16.mxu0 %v3124_v60 }
 0x285   :  { %2750 = vmatpush3.bf16.msra.mxu0 %v3125_v61 }
 0x286   :  { %2751 = vmatprep.subr.bf16.mxu0 %v3126_v62 }
 0x289   :  { %2752 = vmatpush3.bf16.msra.mxu0 %v3127_v63 }
 0x28a   :  { %2753 = vmatprep.subr.bf16.mxu0 %v3128_v0 }
 0x28d   :  { %2754 = vmatpush3.bf16.msra.mxu0 %v3129_v1 }
 0x28e   :  { %2755 = vmatprep.subr.bf16.mxu0 %v3130_v2 }
 0x291   :  { %2756 = vmatpush3.bf16.msra.mxu0 %v3131_v48 }
 0x2cb   :  { %v1840_v10 = vpop.f32.mrb[4].mxu1 }
 0x2cc   :  { %v2773_v11 = vadd.f32 %v1840_v10, %v630_v6  ;;  %v1842_v12 = vpop.f32.mrb[5].mxu1 }
 0x2cd   :  { %v2774_v13 = vadd.f32 %v1842_v12, %v634_v8  ;;  %v1844_v46 = vpop.f32.mrb[6].mxu1 }
 0x2ce   :  { %v1851_v14 = vmax.f32 %v2773_v11, 0.0  ;;  %v1845_v15 = vpop.f32.mrb[7].mxu1 }
 0x2cf   :  { %v1852_v16 = vmax.f32 %v2774_v13, 0.0 }
 0x2d0   :  { %v1857_v18 = vpack.c.bf16 %v1851_v14, %v1851_v14 }
 0x2d1   :  { %v1858_v17 = vpack.c.bf16 %v1852_v16, %v1852_v16 }
 0x2d3   :  { %2362 = vmatprep.mubr.bf16.mxu0 %v1858_v17 }
 0x2d4   :  { %2363 = vmatmul.mubr.bf16.vlgmr.msra.gmra.mrb[16].mxu0 %v1857_v18 }
 0x327   :  { %v2713_v19 = vpop.f32.mrb[8].mxu0 }
 0x328   :  { %v2714_v20 = vpop.f32.mrb[9].mxu0 }
 0x329   :  { %v2715_v21 = vadd.f32 %v2714_v20, %v2713_v19  ;;  %v2716_v7 = vpop.f32.mrb[10].mxu0 }
 0x32a   :  { %v2717_v22 = vpop.f32.mrb[11].mxu0 }
 0x32b   :  { %v2285_v25 = vadd.f32 %v2715_v21, %v2645_v9 }
 0x347   :  { %v2735_v23 = vpop.f32.mrb[12].mxu0 }
 0x348   :  { %v2736_v24 = vpop.f32.mrb[13].mxu0 }
 0x349   :  { %v2737_v26 = vadd.f32 %v2736_v24, %v2735_v23  ;;  %v2738_v27 = vpop.f32.mrb[14].mxu0 }
 0x34a   :  { %v2739_v28 = vpop.f32.mrb[15].mxu0 }
 0x34b   :  { %v2325_v29 = vadd.f32 %v2737_v26, %v2285_v25 }
 0x3a7   :  { %v2757_v30 = vpop.f32.mrb[16].mxu0 }
 0x3a8   :  { %v2758_v31 = vpop.f32.mrb[17].mxu0 }
 0x3a9   :  { %v2759_v32 = vadd.f32 %v2758_v31, %v2757_v30  ;;  %v2760_v33 = vpop.f32.mrb[18].mxu0 }
 0x3aa   :  { %v2761_v34 = vpop.f32.mrb[19].mxu0 }
 0x3ab   :  { %v2365_v35 = vadd.f32 %v2759_v32, %v2325_v29 }
 0x3ad   :  { %2370 = vst [vmem:[#allocation7] sm:$0xff] %v2365_v35 }
 0x3ae   :  { %3187 = shalt.err (!%p3184_p6)
}
 0x3af   :  { %s3188_s11 = scalar_lea.hbm %s3603_s7, 128 }
 0x3b0   :  { %p3189_p7 = scmp.ne.s32.totalorder %s3603_s7, %s3188_s11  ;;  %p3192_p8 = scmp.lt.u32.totalorder %s3188_s11, %s3603_s7 }
 0x3b2   :  { %p3194_p9 = pnand %p3192_p8, %p3189_p7 }
 0x3b4   :  { %3197 = shalt.err (!%p3194_p9)
}
 0x3b5   :  { %2380 = dma.vmem_to_hbm [thread:$0]  %s2378_s9, 128, %s3603_s7, [#allocation4]  }
 0x3b6   :  { %3202 = dma.done.wait [#allocation4], 128  }
 0x3b7   :  { %3203 = vsyncadd [#allocation4], 4294967168 }
 0x3b8   :  { %2384 = vsyncpa [#allocation3], 1 }
 0x3b9   :  { %2385 = vsyncpa [#allocation6], 1 }
 0x3ba   :  { %2386 = vsyncpa [#allocation4], 1 }

</bundles_post_ra>
